<compile_context>
chip_gen: v5e
topology: v5e:2x2
jax: 0.10.0
libtpu: 0.0.40
codegen_flags: <defaults>
</compile_context>

<pallas_src>
import jax
import jax.numpy as jnp
from jax.experimental import pallas as pl
from jax.experimental.pallas import tpu as pltpu


# --------------------------------- kernel ---------------------------------

def atkt_kernel(x_ref, w_ih_ref, w_hh_ref, b_ref, mlp_w_ref, mlp_b_ref,
                sim_ref, causal_ref, fcw_cum_ref, fcw_lstm_ref, fc_b_ref,
                out_ref, gx_scr, lstm_scr, cum_scr):
    L, Bt, D = x_ref.shape
    Hp = w_hh_ref.shape[0]
    G = 4 * Hp
    LB = L * Bt

    # ---- heavy state (LSTM recurrence + causal attention): once per batch tile ----
    @pl.when(pl.program_id(1) == 0)
    def _compute_state():
        # Hoisted input projection: one big bf16 MXU matmul (f32 accumulation).
        x2d = x_ref[...].reshape(LB, D).astype(jnp.bfloat16)
        gx = jnp.dot(x2d, w_ih_ref[...], preferred_element_type=jnp.float32) + b_ref[...]
        gx_scr[...] = gx.reshape(L, Bt, G)

        w_hh = w_hh_ref[...]                     # loop-invariant weight load (f32)
        # TODO(synk): pin w_hh in MXU weight registers (pltpu.matmul_push_rhs /
        # matmul_acc_lhs / matmul_pop) to drop the per-step weight push.

        U = next(u for u in (4, 2, 1) if L % u == 0)   # static unroll factor

        def step_block(tb, carry):
            h, c = carry
            for k in range(U):                   # static unroll -> LLO scheduling slack
                t = tb * U + k
                gates = gx_scr[t] + jnp.dot(h, w_hh, preferred_element_type=jnp.float32)
                # gate columns were permuted in the wrapper to (i, f, o, g):
                sig = jax.nn.sigmoid(gates[:, :3 * Hp])     # one EUP slab: i | f | o
                g = jnp.tanh(gates[:, 3 * Hp:])
                i = sig[:, :Hp]
                f = sig[:, Hp:2 * Hp]
                o = sig[:, 2 * Hp:3 * Hp]
                c = f * c + i * g
                h = o * jnp.tanh(c)
                lstm_scr[t] = h                  # (Bt, Hp), time-major store
            return (h, c)

        h0 = jnp.zeros((Bt, Hp), jnp.float32)
        c0 = jnp.zeros((Bt, Hp), jnp.float32)
        jax.lax.fori_loop(0, L // U, step_block, (h0, c0))

        # ---------- attention_module (fix=True): decomposed causal softmax ----------
        lstm_tm = lstm_scr[...]                              # (L, Bt, Hp), time-major
        lstm2d_b = lstm_tm.reshape(LB, Hp).astype(jnp.bfloat16)

        att_h = jnp.tanh(jnp.dot(lstm2d_b, mlp_w_ref[...],
                                 preferred_element_type=jnp.float32) + mlp_b_ref[...])
        # similarity score = lane-sum against the broadcast sim row (no N=1 MXU matmul)
        att_w = jnp.sum(att_h * sim_ref[...], axis=1, keepdims=True).reshape(L, Bt)

        # Global per-batch shift (softmax-invariant). att_w is tanh-bounded by ||sim_w||_1,
        # so e_w cannot underflow for sane weights (see review note).
        m = jnp.max(att_w, axis=0, keepdims=True)
        e_w = jnp.exp(att_w - m)                             # (L, Bt)

        causal = causal_ref[...]                             # (L, L) bf16 inclusive lower-tri
        # TODO(synk): the (L,Bt,Hp)<->(L,Bt*Hp) reshapes are relayouts; a rank-2 x rank-3
        # dot_general contracting time would remove them if/when Mosaic supports that form.
        weighted = (e_w[:, :, None] * lstm_tm).reshape(L, Bt * Hp).astype(jnp.bfloat16)
        num = jnp.dot(causal, weighted, preferred_element_type=jnp.float32)       # (L, Bt*Hp)
        den = jnp.dot(causal, e_w.astype(jnp.bfloat16),
                      preferred_element_type=jnp.float32)                         # (L, Bt)
        inv_den = pl.reciprocal(den, approx=True)
        attn = num.reshape(L, Bt, Hp) * inv_den[:, :, None]                       # (L, Bt, Hp)

        # exclusive cumsum over time: strict_lower @ attn == causal @ attn - attn
        attn_flat = attn.reshape(L, Bt * Hp)
        cum1 = jnp.dot(causal, attn_flat.astype(jnp.bfloat16),
                       preferred_element_type=jnp.float32) - attn_flat
        cum_scr[...] = cum1.reshape(L, Bt, Hp)

    # ---- final FC slice for this num_c tile (every grid step, split -> no concat) ----
    lstm2d = lstm_scr[...].reshape(LB, Hp).astype(jnp.bfloat16)
    cum2d = cum_scr[...].reshape(LB, Hp).astype(jnp.bfloat16)
    logits = (jnp.dot(cum2d, fcw_cum_ref[...], preferred_element_type=jnp.float32)
              + jnp.dot(lstm2d, fcw_lstm_ref[...], preferred_element_type=jnp.float32)
              + fc_b_ref[...])                                                    # (LB, ct)
    out_ref[...] = jax.nn.sigmoid(logits).reshape(L, Bt, out_ref.shape[2])


# --------------------------------- wrapper ---------------------------------

def _round_up(x, m):
    return ((x + m - 1) // m) * m


def _reorder_pad_gates(w, H, Hp):
    """(rows, 4H) packed [i|f|g|o] -> (rows, 4Hp) packed [i|f|o|g], zero-padded per gate."""
    i, f, g, o = (w[:, k * H:(k + 1) * H] for k in range(4))
    pad = lambda blk: jnp.pad(blk, ((0, 0), (0, Hp - H)))
    return jnp.concatenate([pad(i), pad(f), pad(o), pad(g)], axis=1)


def _vmem_capacity_bytes():
    try:
        info = pltpu.get_tpu_info()
        for attr in ("vmem_capacity_bytes", "vmem_size_bytes", "vmem_bytes"):
            v = getattr(info, attr, None)
            if v:
                return int(v)
    except Exception:
        pass
    return 64 << 20        # conservative default == v7x per-TensorCore VMEM


def atkt_pallas(x, params, num_c):
    """x: (B, L, D) merged skill/answer embedding. Returns (B, L, num_c)."""
    B, L, D = x.shape
    H = params['w_hh'].shape[0]
    A = params['mlp_w'].shape[1]

    Hp = _round_up(H, 128)          # lane-aligned hidden; padded h lanes stay exactly 0
    Ap = _round_up(A, 128)          # lane-aligned attention dim
    C_pad = _round_up(num_c, 128)   # lane-dense output stores
    G = 4 * Hp
    f32, bf16 = jnp.float32, jnp.bfloat16

    # LSTM weights: reorder gate columns to (i, f, o, g), pad each gate block to Hp.
    w_ih = _reorder_pad_gates(params['w_ih'], H, Hp).astype(bf16)                 # (D, 4Hp)
    w_hh = jnp.pad(_reorder_pad_gates(params['w_hh'], H, Hp),
                   ((0, Hp - H), (0, 0))).astype(f32)                             # (Hp, 4Hp)
    b = _reorder_pad_gates(params['b'], H, Hp).astype(f32)                        # (1, 4Hp)

    mlp_w = jnp.pad(params['mlp_w'], ((0, Hp - H), (0, Ap - A))).astype(bf16)     # (Hp, Ap)
    mlp_b = jnp.pad(params['mlp_b'], ((0, 0), (0, Ap - A))).astype(f32)           # (1, Ap)
    sim = jnp.pad(params['sim_w'].reshape(1, A), ((0, 0), (0, Ap - A))).astype(f32)

    fcw_cum = jnp.pad(params['fc_w'][:H], ((0, Hp - H), (0, C_pad - num_c))).astype(bf16)
    fcw_lstm = jnp.pad(params['fc_w'][H:], ((0, Hp - H), (0, C_pad - num_c))).astype(bf16)
    fc_b = jnp.pad(params['fc_b'], ((0, 0), (0, C_pad - num_c))).astype(f32)

    # inclusive lower-triangular causal mask (exact in bf16), built once outside the kernel
    causal = (jnp.arange(L)[None, :] <= jnp.arange(L)[:, None]).astype(bf16)      # (L, L)

    x_tm = jnp.transpose(x, (1, 0, 2)).astype(f32)        # (L, B, D), time-major

    # ---- tile sizes from the per-generation VMEM budget ----
    cap = _vmem_capacity_bytes()
    budget = int(0.55 * cap)                 # headroom for compiler temps / value liveness

    ct = next(c for c in (512, 384, 256, 128) if c <= C_pad and C_pad % c == 0)

    def est_bytes(bt):
        blocks = 2 * (L * bt * D * 4)                                  # x, double-buffered
        blocks += 2 * (L * bt * ct * 4)                                # output slice
        blocks += 2 * (D * G * 2 + Hp * G * 4 + G * 4 + Hp * Ap * 2 + 2 * Ap * 4
                       + L * L * 2 + 2 * Hp * ct * 2 + ct * 4)         # weights / mask
        scratch = L * bt * (G + 2 * Hp) * 4                            # gx, lstm, cum
        temps = L * bt * (G + Ap + 4 * Hp + 2 * ct) * 4                # live value estimate
        return blocks + scratch + temps

    legal = [B] + [c for c in (256, 128, 64, 32, 16, 8) if c < B and B % c == 0]
    bt = legal[-1]
    for cand in legal:                       # descending; first one that fits the budget
        if est_bytes(cand) <= budget:
            bt = cand
            break
    # v7x has 2 TensorCores: keep >= 2 steps on the parallel (batch) axis when possible.
    if B // bt == 1 and B >= 16 and (B // 2) % 8 == 0:
        bt = B // 2

    grid = (B // bt, C_pad // ct)
    const = lambda i, c: (0, 0)

    in_specs = [
        pl.BlockSpec((L, bt, D), lambda i, c: (0, i, 0)),     # x (time-major), batch-tiled
        pl.BlockSpec((D, G), const),                          # w_ih (bf16)
        pl.BlockSpec((Hp, G), const),                         # w_hh (f32)
        pl.BlockSpec((1, G), const),                          # b (= b_ih + b_hh)
        pl.BlockSpec((Hp, Ap), const),                        # mlp_w (bf16)
        pl.BlockSpec((1, Ap), const),                         # mlp_b
        pl.BlockSpec((1, Ap), const),                         # sim row
        pl.BlockSpec((L, L), const),                          # causal mask (bf16)
        pl.BlockSpec((Hp, ct), lambda i, c: (0, c)),          # fc_w[:H]  (bf16), C-tiled
        pl.BlockSpec((Hp, ct), lambda i, c: (0, c)),          # fc_w[H:]  (bf16), C-tiled
        pl.BlockSpec((1, ct), lambda i, c: (0, c)),           # fc_b, C-tiled
    ]
    out_spec = pl.BlockSpec((L, bt, ct), lambda i, c: (0, i, c))

    vmem_limit = int(min(0.85 * cap, 112 << 20))

    out_tm = pl.pallas_call(
        atkt_kernel,
        out_shape=jax.ShapeDtypeStruct((L, B, C_pad), f32),
        grid=grid,
        in_specs=in_specs,
        out_specs=out_spec,
        scratch_shapes=[pltpu.VMEM((L, bt, G), f32),     # hoisted input gates
                        pltpu.VMEM((L, bt, Hp), f32),    # LSTM hidden states
                        pltpu.VMEM((L, bt, Hp), f32)],   # exclusive cumulative attention
        compiler_params=pltpu.CompilerParams(
            dimension_semantics=("parallel", "arbitrary"),
            vmem_limit_bytes=vmem_limit),
    )(x_tm, w_ih, w_hh, b, mlp_w, mlp_b, sim, causal, fcw_cum, fcw_lstm, fc_b)

    # back to batch-major, drop lane padding (tiny, plain JAX)
    return jnp.transpose(out_tm, (1, 0, 2))[:, :, :num_c]


def atkt_forward(skill, answer, params, num_c):
    """Full forward (matches ATKT.forward with perturbation=None, eval-mode dropout)."""
    skill_e = params['skill_emb'][skill]                                 # (B, L, Sd)
    answer_e = params['answer_emb'][answer]                              # (B, L, Ad)
    skill_answer = jnp.concatenate([skill_e, answer_e], axis=2)
    answer_skill = jnp.concatenate([answer_e, skill_e], axis=2)
    x = jnp.where(answer[:, :, None] == 1, skill_answer, answer_skill)   # (B, L, D)
    res = atkt_pallas(x, params, num_c)
    return res, x


def atkt_reference(x, params):
    """Pure-JAX f32 reference of the kernel math (masked-softmax formulation)."""
    B, L, D = x.shape
    H = params['w_hh'].shape[0]

    def step(carry, x_t):
        h, c = carry
        gates = x_t @ params['w_ih'] + h @ params['w_hh'] + params['b']
        i = jax.nn.sigmoid(gates[:, :H])
        f = jax.nn.sigmoid(gates[:, H:2 * H])
        g = jnp.tanh(gates[:, 2 * H:3 * H])
        o = jax.nn.sigmoid(gates[:, 3 * H:])
        c = f * c + i * g
        h = o * jnp.tanh(c)
        return (h, c), h

    init = (jnp.zeros((B, H), jnp.float32), jnp.zeros((B, H), jnp.float32))
    _, hs = jax.lax.scan(step, init, jnp.transpose(x, (1, 0, 2)))
    lstm_out = jnp.transpose(hs, (1, 0, 2))                              # (B, L, H)

    att_w = jnp.tanh(lstm_out @ params['mlp_w'] + params['mlp_b']) @ params['sim_w']
    att_w = jnp.squeeze(att_w, -1)                                       # (B, L)
    row = jnp.arange(L)[:, None]
    col = jnp.arange(L)[None, :]
    scores = jnp.where((col <= row)[None], att_w[:, None, :], jnp.float32(-1e30))
    alphas = jax.nn.softmax(scores, axis=-1)
    attn = jnp.einsum('bij,bjh->bih', alphas, lstm_out)
    cum_1 = jnp.cumsum(attn, axis=1) - attn
    final = jnp.concatenate([cum_1, lstm_out], axis=-1)
    return jax.nn.sigmoid(final @ params['fc_w'] + params['fc_b'])


if __name__ == "__main__":
    # Small, forward-consistent shapes.
    num_c, skill_dim, answer_dim, hidden_dim, attention_dim = 20, 16, 16, 32, 16
    B, L = 2, 8
    D = skill_dim + answer_dim

    key = jax.random.PRNGKey(0)
    keys = jax.random.split(key, 12)
    sc = 0.1

    skill_table = jax.random.normal(keys[0], (num_c + 1, skill_dim), jnp.float32) * sc
    skill_table = skill_table.at[-1].set(0.0)          # skill_emb.weight.data[-1] = 0
    answer_table = jax.random.normal(keys[1], (3, answer_dim), jnp.float32) * sc
    answer_table = answer_table.at[-1].set(0.0)        # answer_emb.weight.data[-1] = 0

    params = dict(
        skill_emb=skill_table,
        answer_emb=answer_table,
        w_ih=jax.random.normal(keys[2], (D, 4 * hidden_dim), jnp.float32) * sc,
        w_hh=jax.random.normal(keys[3], (hidden_dim, 4 * hidden_dim), jnp.float32) * sc,
        b=jax.random.normal(keys[4], (1, 4 * hidden_dim), jnp.float32) * sc,   # b_ih + b_hh
        mlp_w=jax.random.normal(keys[5], (hidden_dim, attention_dim), jnp.float32) * sc,
        mlp_b=jax.random.normal(keys[6], (1, attention_dim), jnp.float32) * sc,
        sim_w=jax.random.normal(keys[7], (attention_dim, 1), jnp.float32) * sc,
        fc_w=jax.random.normal(keys[8], (2 * hidden_dim, num_c), jnp.float32) * sc,
        fc_b=jax.random.normal(keys[9], (1, num_c), jnp.float32) * sc,
    )

    skill = jax.random.randint(keys[10], (B, L), 0, num_c)
    answer = jax.random.randint(keys[11], (B, L), 0, 2)

    res, skill_answer_embedding1 = atkt_forward(skill, answer, params, num_c)
    res = jax.block_until_ready(res)
    jax.block_until_ready(skill_answer_embedding1)

    # Sanity-check against the f32 pure-JAX reference. Tolerance loosened vs the previous
    # revision because the big matmuls now use bf16 operands (f32 accumulation) and the
    # attention normalization uses pl.reciprocal(approx=True).
    x = skill_answer_embedding1
    ref = atkt_reference(x, params)
    assert res.shape == (B, L, num_c)
    assert skill_answer_embedding1.shape == (B, L, D)
    assert jnp.allclose(res, ref, atol=2e-2, rtol=2e-2), "kernel mismatch vs reference"

    print("KERNEL_OK")
</pallas_src>

<mosaic_0001>
module attributes {stable_mosaic.version = 11 : i64} {
  func.func @atkt_kernel(%arg0: i32, %arg1: i32, %arg2: memref<8x2x32xf32, #tpu.memory_space<vmem>>, %arg3: memref<32x512xbf16, #tpu.memory_space<vmem>>, %arg4: memref<128x512xf32, #tpu.memory_space<vmem>>, %arg5: memref<1x512xf32, #tpu.memory_space<vmem>>, %arg6: memref<128x128xbf16, #tpu.memory_space<vmem>>, %arg7: memref<1x128xf32, #tpu.memory_space<vmem>>, %arg8: memref<1x128xf32, #tpu.memory_space<vmem>>, %arg9: memref<8x8xbf16, #tpu.memory_space<vmem>>, %arg10: memref<128x128xbf16, #tpu.memory_space<vmem>>, %arg11: memref<128x128xbf16, #tpu.memory_space<vmem>>, %arg12: memref<1x128xf32, #tpu.memory_space<vmem>>, %arg13: memref<8x2x128xf32, #tpu.memory_space<vmem>>, %arg14: memref<8x2x512xf32, #tpu.memory_space<vmem>>, %arg15: memref<8x2x128xf32, #tpu.memory_space<vmem>>, %arg16: memref<8x2x128xf32, #tpu.memory_space<vmem>>) attributes {dimension_semantics = [#tpu.dimension_semantics<parallel>, #tpu.dimension_semantics<arbitrary>], iteration_bounds = array<i64: 1, 1>, scalar_prefetch = 0 : i64, scratch_operands = 3 : i64, tpu.core_type = #tpu.core_type<tc>, window_params = [{transform_indices = @transform_0, window_bounds = array<i64: 8, 2, 32>}, {pipeline_mode = #tpu.pipeline_mode<synchronous>, transform_indices = @transform_1, window_bounds = array<i64: 32, 512>}, {pipeline_mode = #tpu.pipeline_mode<synchronous>, transform_indices = @transform_2, window_bounds = array<i64: 128, 512>}, {pipeline_mode = #tpu.pipeline_mode<synchronous>, transform_indices = @transform_3, window_bounds = array<i64: 1, 512>}, {pipeline_mode = #tpu.pipeline_mode<synchronous>, transform_indices = @transform_4, window_bounds = array<i64: 128, 128>}, {pipeline_mode = #tpu.pipeline_mode<synchronous>, transform_indices = @transform_5, window_bounds = array<i64: 1, 128>}, {pipeline_mode = #tpu.pipeline_mode<synchronous>, transform_indices = @transform_6, window_bounds = array<i64: 1, 128>}, {pipeline_mode = #tpu.pipeline_mode<synchronous>, transform_indices = @transform_7, window_bounds = array<i64: 8, 8>}, {transform_indices = @transform_8, window_bounds = array<i64: 128, 128>}, {transform_indices = @transform_9, window_bounds = array<i64: 128, 128>}, {transform_indices = @transform_10, window_bounds = array<i64: 1, 128>}, {transform_indices = @transform_11, window_bounds = array<i64: 8, 2, 128>}]} {
    %c0_i32 = arith.constant 0 : i32
    %0 = arith.cmpi eq, %arg1, %c0_i32 : i32
    %1 = arith.extui %0 : i1 to i32
    %c0_i32_0 = arith.constant 0 : i32
    %2 = arith.cmpi ne, %1, %c0_i32_0 : i32
    scf.if %2 {
      %c0_17 = arith.constant 0 : index
      %c0_18 = arith.constant 0 : index
      %c0_19 = arith.constant 0 : index
      %24 = vector.load %arg2[%c0_17, %c0_18, %c0_19] : memref<8x2x32xf32, #tpu.memory_space<vmem>>, vector<8x2x32xf32>
      %25 = vector.shape_cast %24 : vector<8x2x32xf32> to vector<16x32xf32>
      %26 = arith.truncf %25 : vector<16x32xf32> to vector<16x32xbf16>
      %c0_20 = arith.constant 0 : index
      %c0_21 = arith.constant 0 : index
      %27 = vector.load %arg3[%c0_20, %c0_21] : memref<32x512xbf16, #tpu.memory_space<vmem>>, vector<32x512xbf16>
      %cst_22 = arith.constant dense<0.000000e+00> : vector<16x512xf32>
      %28 = tpu.matmul %26, %27, %cst_22 {dimension_numbers = #tpu.dot_dimension_numbers<[1], [0], [0], [1], [0, 0, 1, 1], [], []>} : vector<16x32xbf16>, vector<32x512xbf16>, vector<16x512xf32> -> vector<16x512xf32>
      %c0_23 = arith.constant 0 : index
      %c0_24 = arith.constant 0 : index
      %29 = vector.load %arg5[%c0_23, %c0_24] : memref<1x512xf32, #tpu.memory_space<vmem>>, vector<1x512xf32>
      %30 = vector.broadcast %29 : vector<1x512xf32> to vector<16x512xf32>
      %31 = arith.addf %28, %30 : vector<16x512xf32>
      %32 = vector.shape_cast %31 : vector<16x512xf32> to vector<8x2x512xf32>
      %c0_25 = arith.constant 0 : index
      %c0_26 = arith.constant 0 : index
      %c0_27 = arith.constant 0 : index
      %33 = vector.load %arg14[%c0_25, %c0_26, %c0_27] : memref<8x2x512xf32, #tpu.memory_space<vmem>>, vector<8x2x512xf32>
      tpu.vector_store %arg14[%c0_25, %c0_26, %c0_27], %32 {strides = array<i32>} : memref<8x2x512xf32, #tpu.memory_space<vmem>>, vector<8x2x512xf32>,
      %c0_28 = arith.constant 0 : index
      %c0_29 = arith.constant 0 : index
      %34 = vector.load %arg4[%c0_28, %c0_29] : memref<128x512xf32, #tpu.memory_space<vmem>>, vector<128x512xf32>
      %cst_30 = arith.constant 0.000000e+00 : f32
      %35 = vector.broadcast %cst_30 : f32 to vector<2x128xf32>
      %cst_31 = arith.constant 0.000000e+00 : f32
      %36 = vector.broadcast %cst_31 : f32 to vector<2x128xf32>
      %c0_i32_32 = arith.constant 0 : i32
      %c2_i32 = arith.constant 2 : i32
      %37 = arith.addi %c0_i32_32, %c2_i32 : i32
      %c1_i32 = arith.constant 1 : i32
      %38:2 = scf.for %arg17 = %c0_i32_32 to %37 step %c1_i32 iter_args(%arg18 = %35, %arg19 = %36) -> (vector<2x128xf32>, vector<2x128xf32>)  : i32 {
        %c4_i32 = arith.constant 4 : i32
        %79 = arith.muli %arg17, %c4_i32 : i32
        %c0_i32_54 = arith.constant 0 : i32
        %80 = arith.addi %79, %c0_i32_54 : i32
        %81 = arith.index_cast %80 : i32 to index
        %c0_55 = arith.constant 0 : index
        %c0_56 = arith.constant 0 : index
        %82 = vector.load %arg14[%81, %c0_55, %c0_56] : memref<8x2x512xf32, #tpu.memory_space<vmem>>, vector<1x2x512xf32>
        %83 = vector.shape_cast %82 : vector<1x2x512xf32> to vector<2x512xf32>
        %cst_57 = arith.constant dense<0.000000e+00> : vector<2x512xf32>
        %84 = tpu.matmul %arg18, %34, %cst_57 {dimension_numbers = #tpu.dot_dimension_numbers<[1], [0], [0], [1], [0, 0, 1, 1], [], []>} : vector<2x128xf32>, vector<128x512xf32>, vector<2x512xf32> -> vector<2x512xf32>
        %85 = arith.addf %83, %84 : vector<2x512xf32>
        %86 = vector.extract_strided_slice %85 {offsets = [0, 0], sizes = [2, 384], strides = [1, 1]} : vector<2x512xf32> to vector<2x384xf32>
        %87 = arith.negf %86 : vector<2x384xf32>
        %88 = math.exp %87 : vector<2x384xf32>
        %cst_58 = arith.constant 1.000000e+00 : f32
        %89 = vector.broadcast %cst_58 : f32 to vector<2x384xf32>
        %90 = arith.addf %89, %88 : vector<2x384xf32>
        %91 = arith.divf %89, %90 : vector<2x384xf32>
        %92 = vector.extract_strided_slice %85 {offsets = [0, 384], sizes = [2, 128], strides = [1, 1]} : vector<2x512xf32> to vector<2x128xf32>
        %93 = math.tanh %92 : vector<2x128xf32>
        %94 = vector.extract_strided_slice %91 {offsets = [0, 0], sizes = [2, 128], strides = [1, 1]} : vector<2x384xf32> to vector<2x128xf32>
        %95 = vector.extract_strided_slice %91 {offsets = [0, 128], sizes = [2, 128], strides = [1, 1]} : vector<2x384xf32> to vector<2x128xf32>
        %96 = vector.extract_strided_slice %91 {offsets = [0, 256], sizes = [2, 128], strides = [1, 1]} : vector<2x384xf32> to vector<2x128xf32>
        %97 = arith.mulf %95, %arg19 : vector<2x128xf32>
        %98 = arith.mulf %94, %93 : vector<2x128xf32>
        %99 = arith.addf %97, %98 : vector<2x128xf32>
        %100 = math.tanh %99 : vector<2x128xf32>
        %101 = arith.mulf %96, %100 : vector<2x128xf32>
        %102 = arith.index_cast %80 : i32 to index
        %c0_59 = arith.constant 0 : index
        %c0_60 = arith.constant 0 : index
        %103 = vector.load %arg15[%102, %c0_59, %c0_60] : memref<8x2x128xf32, #tpu.memory_space<vmem>>, vector<1x2x128xf32>
        %104 = vector.shape_cast %103 : vector<1x2x128xf32> to vector<2x128xf32>
        %105 = vector.shape_cast %101 : vector<2x128xf32> to vector<1x2x128xf32>
        tpu.vector_store %arg15[%102, %c0_59, %c0_60], %105 {strides = array<i32>} : memref<8x2x128xf32, #tpu.memory_space<vmem>>, vector<1x2x128xf32>,
        %c4_i32_61 = arith.constant 4 : i32
        %106 = arith.muli %arg17, %c4_i32_61 : i32
        %c1_i32_62 = arith.constant 1 : i32
        %107 = arith.addi %106, %c1_i32_62 : i32
        %108 = arith.index_cast %107 : i32 to index
        %c0_63 = arith.constant 0 : index
        %c0_64 = arith.constant 0 : index
        %109 = vector.load %arg14[%108, %c0_63, %c0_64] : memref<8x2x512xf32, #tpu.memory_space<vmem>>, vector<1x2x512xf32>
        %110 = vector.shape_cast %109 : vector<1x2x512xf32> to vector<2x512xf32>
        %cst_65 = arith.constant dense<0.000000e+00> : vector<2x512xf32>
        %111 = tpu.matmul %101, %34, %cst_65 {dimension_numbers = #tpu.dot_dimension_numbers<[1], [0], [0], [1], [0, 0, 1, 1], [], []>} : vector<2x128xf32>, vector<128x512xf32>, vector<2x512xf32> -> vector<2x512xf32>
        %112 = arith.addf %110, %111 : vector<2x512xf32>
        %113 = vector.extract_strided_slice %112 {offsets = [0, 0], sizes = [2, 384], strides = [1, 1]} : vector<2x512xf32> to vector<2x384xf32>
        %114 = arith.negf %113 : vector<2x384xf32>
        %115 = math.exp %114 : vector<2x384xf32>
        %cst_66 = arith.constant 1.000000e+00 : f32
        %116 = vector.broadcast %cst_66 : f32 to vector<2x384xf32>
        %117 = arith.addf %116, %115 : vector<2x384xf32>
        %118 = arith.divf %116, %117 : vector<2x384xf32>
        %119 = vector.extract_strided_slice %112 {offsets = [0, 384], sizes = [2, 128], strides = [1, 1]} : vector<2x512xf32> to vector<2x128xf32>
        %120 = math.tanh %119 : vector<2x128xf32>
        %121 = vector.extract_strided_slice %118 {offsets = [0, 0], sizes = [2, 128], strides = [1, 1]} : vector<2x384xf32> to vector<2x128xf32>
        %122 = vector.extract_strided_slice %118 {offsets = [0, 128], sizes = [2, 128], strides = [1, 1]} : vector<2x384xf32> to vector<2x128xf32>
        %123 = vector.extract_strided_slice %118 {offsets = [0, 256], sizes = [2, 128], strides = [1, 1]} : vector<2x384xf32> to vector<2x128xf32>
        %124 = arith.mulf %122, %99 : vector<2x128xf32>
        %125 = arith.mulf %121, %120 : vector<2x128xf32>
        %126 = arith.addf %124, %125 : vector<2x128xf32>
        %127 = math.tanh %126 : vector<2x128xf32>
        %128 = arith.mulf %123, %127 : vector<2x128xf32>
        %129 = arith.index_cast %107 : i32 to index
        %c0_67 = arith.constant 0 : index
        %c0_68 = arith.constant 0 : index
        %130 = vector.load %arg15[%129, %c0_67, %c0_68] : memref<8x2x128xf32, #tpu.memory_space<vmem>>, vector<1x2x128xf32>
        %131 = vector.shape_cast %130 : vector<1x2x128xf32> to vector<2x128xf32>
        %132 = vector.shape_cast %128 : vector<2x128xf32> to vector<1x2x128xf32>
        tpu.vector_store %arg15[%129, %c0_67, %c0_68], %132 {strides = array<i32>} : memref<8x2x128xf32, #tpu.memory_space<vmem>>, vector<1x2x128xf32>,
        %c4_i32_69 = arith.constant 4 : i32
        %133 = arith.muli %arg17, %c4_i32_69 : i32
        %c2_i32_70 = arith.constant 2 : i32
        %134 = arith.addi %133, %c2_i32_70 : i32
        %135 = arith.index_cast %134 : i32 to index
        %c0_71 = arith.constant 0 : index
        %c0_72 = arith.constant 0 : index
        %136 = vector.load %arg14[%135, %c0_71, %c0_72] : memref<8x2x512xf32, #tpu.memory_space<vmem>>, vector<1x2x512xf32>
        %137 = vector.shape_cast %136 : vector<1x2x512xf32> to vector<2x512xf32>
        %cst_73 = arith.constant dense<0.000000e+00> : vector<2x512xf32>
        %138 = tpu.matmul %128, %34, %cst_73 {dimension_numbers = #tpu.dot_dimension_numbers<[1], [0], [0], [1], [0, 0, 1, 1], [], []>} : vector<2x128xf32>, vector<128x512xf32>, vector<2x512xf32> -> vector<2x512xf32>
        %139 = arith.addf %137, %138 : vector<2x512xf32>
        %140 = vector.extract_strided_slice %139 {offsets = [0, 0], sizes = [2, 384], strides = [1, 1]} : vector<2x512xf32> to vector<2x384xf32>
        %141 = arith.negf %140 : vector<2x384xf32>
        %142 = math.exp %141 : vector<2x384xf32>
        %cst_74 = arith.constant 1.000000e+00 : f32
        %143 = vector.broadcast %cst_74 : f32 to vector<2x384xf32>
        %144 = arith.addf %143, %142 : vector<2x384xf32>
        %145 = arith.divf %143, %144 : vector<2x384xf32>
        %146 = vector.extract_strided_slice %139 {offsets = [0, 384], sizes = [2, 128], strides = [1, 1]} : vector<2x512xf32> to vector<2x128xf32>
        %147 = math.tanh %146 : vector<2x128xf32>
        %148 = vector.extract_strided_slice %145 {offsets = [0, 0], sizes = [2, 128], strides = [1, 1]} : vector<2x384xf32> to vector<2x128xf32>
        %149 = vector.extract_strided_slice %145 {offsets = [0, 128], sizes = [2, 128], strides = [1, 1]} : vector<2x384xf32> to vector<2x128xf32>
        %150 = vector.extract_strided_slice %145 {offsets = [0, 256], sizes = [2, 128], strides = [1, 1]} : vector<2x384xf32> to vector<2x128xf32>
        %151 = arith.mulf %149, %126 : vector<2x128xf32>
        %152 = arith.mulf %148, %147 : vector<2x128xf32>
        %153 = arith.addf %151, %152 : vector<2x128xf32>
        %154 = math.tanh %153 : vector<2x128xf32>
        %155 = arith.mulf %150, %154 : vector<2x128xf32>
        %156 = arith.index_cast %134 : i32 to index
        %c0_75 = arith.constant 0 : index
        %c0_76 = arith.constant 0 : index
        %157 = vector.load %arg15[%156, %c0_75, %c0_76] : memref<8x2x128xf32, #tpu.memory_space<vmem>>, vector<1x2x128xf32>
        %158 = vector.shape_cast %157 : vector<1x2x128xf32> to vector<2x128xf32>
        %159 = vector.shape_cast %155 : vector<2x128xf32> to vector<1x2x128xf32>
        tpu.vector_store %arg15[%156, %c0_75, %c0_76], %159 {strides = array<i32>} : memref<8x2x128xf32, #tpu.memory_space<vmem>>, vector<1x2x128xf32>,
        %c4_i32_77 = arith.constant 4 : i32
        %160 = arith.muli %arg17, %c4_i32_77 : i32
        %c3_i32 = arith.constant 3 : i32
        %161 = arith.addi %160, %c3_i32 : i32
        %162 = arith.index_cast %161 : i32 to index
        %c0_78 = arith.constant 0 : index
        %c0_79 = arith.constant 0 : index
        %163 = vector.load %arg14[%162, %c0_78, %c0_79] : memref<8x2x512xf32, #tpu.memory_space<vmem>>, vector<1x2x512xf32>
        %164 = vector.shape_cast %163 : vector<1x2x512xf32> to vector<2x512xf32>
        %cst_80 = arith.constant dense<0.000000e+00> : vector<2x512xf32>
        %165 = tpu.matmul %155, %34, %cst_80 {dimension_numbers = #tpu.dot_dimension_numbers<[1], [0], [0], [1], [0, 0, 1, 1], [], []>} : vector<2x128xf32>, vector<128x512xf32>, vector<2x512xf32> -> vector<2x512xf32>
        %166 = arith.addf %164, %165 : vector<2x512xf32>
        %167 = vector.extract_strided_slice %166 {offsets = [0, 0], sizes = [2, 384], strides = [1, 1]} : vector<2x512xf32> to vector<2x384xf32>
        %168 = arith.negf %167 : vector<2x384xf32>
        %169 = math.exp %168 : vector<2x384xf32>
        %cst_81 = arith.constant 1.000000e+00 : f32
        %170 = vector.broadcast %cst_81 : f32 to vector<2x384xf32>
        %171 = arith.addf %170, %169 : vector<2x384xf32>
        %172 = arith.divf %170, %171 : vector<2x384xf32>
        %173 = vector.extract_strided_slice %166 {offsets = [0, 384], sizes = [2, 128], strides = [1, 1]} : vector<2x512xf32> to vector<2x128xf32>
        %174 = math.tanh %173 : vector<2x128xf32>
        %175 = vector.extract_strided_slice %172 {offsets = [0, 0], sizes = [2, 128], strides = [1, 1]} : vector<2x384xf32> to vector<2x128xf32>
        %176 = vector.extract_strided_slice %172 {offsets = [0, 128], sizes = [2, 128], strides = [1, 1]} : vector<2x384xf32> to vector<2x128xf32>
        %177 = vector.extract_strided_slice %172 {offsets = [0, 256], sizes = [2, 128], strides = [1, 1]} : vector<2x384xf32> to vector<2x128xf32>
        %178 = arith.mulf %176, %153 : vector<2x128xf32>
        %179 = arith.mulf %175, %174 : vector<2x128xf32>
        %180 = arith.addf %178, %179 : vector<2x128xf32>
        %181 = math.tanh %180 : vector<2x128xf32>
        %182 = arith.mulf %177, %181 : vector<2x128xf32>
        %183 = arith.index_cast %161 : i32 to index
        %c0_82 = arith.constant 0 : index
        %c0_83 = arith.constant 0 : index
        %184 = vector.load %arg15[%183, %c0_82, %c0_83] : memref<8x2x128xf32, #tpu.memory_space<vmem>>, vector<1x2x128xf32>
        %185 = vector.shape_cast %184 : vector<1x2x128xf32> to vector<2x128xf32>
        %186 = vector.shape_cast %182 : vector<2x128xf32> to vector<1x2x128xf32>
        tpu.vector_store %arg15[%183, %c0_82, %c0_83], %186 {strides = array<i32>} : memref<8x2x128xf32, #tpu.memory_space<vmem>>, vector<1x2x128xf32>,
        scf.yield %182, %180 : vector<2x128xf32>, vector<2x128xf32>
      }
      %c2_i32_33 = arith.constant 2 : i32
      %c0_34 = arith.constant 0 : index
      %c0_35 = arith.constant 0 : index
      %c0_36 = arith.constant 0 : index
      %39 = vector.load %arg15[%c0_34, %c0_35, %c0_36] : memref<8x2x128xf32, #tpu.memory_space<vmem>>, vector<8x2x128xf32>
      %40 = vector.shape_cast %39 : vector<8x2x128xf32> to vector<16x128xf32>
      %41 = arith.truncf %40 : vector<16x128xf32> to vector<16x128xbf16>
      %c0_37 = arith.constant 0 : index
      %c0_38 = arith.constant 0 : index
      %42 = vector.load %arg6[%c0_37, %c0_38] : memref<128x128xbf16, #tpu.memory_space<vmem>>, vector<128x128xbf16>
      %cst_39 = arith.constant dense<0.000000e+00> : vector<16x128xf32>
      %43 = tpu.matmul %41, %42, %cst_39 {dimension_numbers = #tpu.dot_dimension_numbers<[1], [0], [0], [1], [0, 0, 1, 1], [], []>} : vector<16x128xbf16>, vector<128x128xbf16>, vector<16x128xf32> -> vector<16x128xf32>
      %c0_40 = arith.constant 0 : index
      %c0_41 = arith.constant 0 : index
      %44 = vector.load %arg7[%c0_40, %c0_41] : memref<1x128xf32, #tpu.memory_space<vmem>>, vector<1x128xf32>
      %45 = vector.broadcast %44 : vector<1x128xf32> to vector<16x128xf32>
      %46 = arith.addf %43, %45 : vector<16x128xf32>
      %47 = math.tanh %46 : vector<16x128xf32>
      %c0_42 = arith.constant 0 : index
      %c0_43 = arith.constant 0 : index
      %48 = vector.load %arg8[%c0_42, %c0_43] : memref<1x128xf32, #tpu.memory_space<vmem>>, vector<1x128xf32>
      %49 = vector.broadcast %48 : vector<1x128xf32> to vector<16x128xf32>
      %50 = arith.mulf %47, %49 : vector<16x128xf32>
      %cst_44 = arith.constant dense<0.000000e+00> : vector<16xf32>
      %51 = vector.multi_reduction <add>, %50, %cst_44 [1] : vector<16x128xf32> to vector<16xf32>
      %52 = vector.shape_cast %51 : vector<16xf32> to vector<16x1xf32>
      %53 = vector.shape_cast %52 : vector<16x1xf32> to vector<8x2xf32>
      %cst_45 = arith.constant dense<0xFF800000> : vector<2xf32>
      %54 = vector.multi_reduction <maximumf>, %53, %cst_45 [0] : vector<8x2xf32> to vector<2xf32>
      %55 = vector.shape_cast %54 : vector<2xf32> to vector<1x2xf32>
      %56 = vector.broadcast %55 : vector<1x2xf32> to vector<8x2xf32>
      %57 = arith.subf %53, %56 : vector<8x2xf32>
      %58 = math.exp %57 : vector<8x2xf32>
      %c0_46 = arith.constant 0 : index
      %c0_47 = arith.constant 0 : index
      %59 = vector.load %arg9[%c0_46, %c0_47] : memref<8x8xbf16, #tpu.memory_space<vmem>>, vector<8x8xbf16>
      %60 = vector.shape_cast %58 : vector<8x2xf32> to vector<8x2x1xf32>
      %61 = vector.broadcast %60 : vector<8x2x1xf32> to vector<8x2x128xf32>
      %62 = arith.mulf %61, %39 : vector<8x2x128xf32>
      %63 = vector.shape_cast %62 : vector<8x2x128xf32> to vector<8x256xf32>
      %64 = arith.truncf %63 : vector<8x256xf32> to vector<8x256xbf16>
      %cst_48 = arith.constant dense<0.000000e+00> : vector<8x256xf32>
      %65 = tpu.matmul %59, %64, %cst_48 {dimension_numbers = #tpu.dot_dimension_numbers<[1], [0], [0], [1], [0, 0, 1, 1], [], []>} : vector<8x8xbf16>, vector<8x256xbf16>, vector<8x256xf32> -> vector<8x256xf32>
      %66 = arith.truncf %58 : vector<8x2xf32> to vector<8x2xbf16>
      %cst_49 = arith.constant dense<0.000000e+00> : vector<8x2xf32>
      %67 = tpu.matmul %59, %66, %cst_49 {dimension_numbers = #tpu.dot_dimension_numbers<[1], [0], [0], [1], [0, 0, 1, 1], [], []>} : vector<8x8xbf16>, vector<8x2xbf16>, vector<8x2xf32> -> vector<8x2xf32>
      %68 = tpu.reciprocal %67 {approx = true} : vector<8x2xf32> -> vector<8x2xf32>
      %69 = vector.shape_cast %65 : vector<8x256xf32> to vector<8x2x128xf32>
      %70 = vector.shape_cast %68 : vector<8x2xf32> to vector<8x2x1xf32>
      %71 = vector.broadcast %70 : vector<8x2x1xf32> to vector<8x2x128xf32>
      %72 = arith.mulf %69, %71 : vector<8x2x128xf32>
      %73 = vector.shape_cast %72 : vector<8x2x128xf32> to vector<8x256xf32>
      %74 = arith.truncf %73 : vector<8x256xf32> to vector<8x256xbf16>
      %cst_50 = arith.constant dense<0.000000e+00> : vector<8x256xf32>
      %75 = tpu.matmul %59, %74, %cst_50 {dimension_numbers = #tpu.dot_dimension_numbers<[1], [0], [0], [1], [0, 0, 1, 1], [], []>} : vector<8x8xbf16>, vector<8x256xbf16>, vector<8x256xf32> -> vector<8x256xf32>
      %76 = arith.subf %75, %73 : vector<8x256xf32>
      %77 = vector.shape_cast %76 : vector<8x256xf32> to vector<8x2x128xf32>
      %c0_51 = arith.constant 0 : index
      %c0_52 = arith.constant 0 : index
      %c0_53 = arith.constant 0 : index
      %78 = vector.load %arg16[%c0_51, %c0_52, %c0_53] : memref<8x2x128xf32, #tpu.memory_space<vmem>>, vector<8x2x128xf32>
      tpu.vector_store %arg16[%c0_51, %c0_52, %c0_53], %77 {strides = array<i32>} : memref<8x2x128xf32, #tpu.memory_space<vmem>>, vector<8x2x128xf32>,
    } else {
    }
    %c0 = arith.constant 0 : index
    %c0_1 = arith.constant 0 : index
    %c0_2 = arith.constant 0 : index
    %3 = vector.load %arg15[%c0, %c0_1, %c0_2] : memref<8x2x128xf32, #tpu.memory_space<vmem>>, vector<8x2x128xf32>
    %4 = vector.shape_cast %3 : vector<8x2x128xf32> to vector<16x128xf32>
    %5 = arith.truncf %4 : vector<16x128xf32> to vector<16x128xbf16>
    %c0_3 = arith.constant 0 : index
    %c0_4 = arith.constant 0 : index
    %c0_5 = arith.constant 0 : index
    %6 = vector.load %arg16[%c0_3, %c0_4, %c0_5] : memref<8x2x128xf32, #tpu.memory_space<vmem>>, vector<8x2x128xf32>
    %7 = vector.shape_cast %6 : vector<8x2x128xf32> to vector<16x128xf32>
    %8 = arith.truncf %7 : vector<16x128xf32> to vector<16x128xbf16>
    %c0_6 = arith.constant 0 : index
    %c0_7 = arith.constant 0 : index
    %9 = vector.load %arg10[%c0_6, %c0_7] : memref<128x128xbf16, #tpu.memory_space<vmem>>, vector<128x128xbf16>
    %cst = arith.constant dense<0.000000e+00> : vector<16x128xf32>
    %10 = tpu.matmul %8, %9, %cst {dimension_numbers = #tpu.dot_dimension_numbers<[1], [0], [0], [1], [0, 0, 1, 1], [], []>} : vector<16x128xbf16>, vector<128x128xbf16>, vector<16x128xf32> -> vector<16x128xf32>
    %c0_8 = arith.constant 0 : index
    %c0_9 = arith.constant 0 : index
    %11 = vector.load %arg11[%c0_8, %c0_9] : memref<128x128xbf16, #tpu.memory_space<vmem>>, vector<128x128xbf16>
    %cst_10 = arith.constant dense<0.000000e+00> : vector<16x128xf32>
    %12 = tpu.matmul %5, %11, %cst_10 {dimension_numbers = #tpu.dot_dimension_numbers<[1], [0], [0], [1], [0, 0, 1, 1], [], []>} : vector<16x128xbf16>, vector<128x128xbf16>, vector<16x128xf32> -> vector<16x128xf32>
    %13 = arith.addf %10, %12 : vector<16x128xf32>
    %c0_11 = arith.constant 0 : index
    %c0_12 = arith.constant 0 : index
    %14 = vector.load %arg12[%c0_11, %c0_12] : memref<1x128xf32, #tpu.memory_space<vmem>>, vector<1x128xf32>
    %15 = vector.broadcast %14 : vector<1x128xf32> to vector<16x128xf32>
    %16 = arith.addf %13, %15 : vector<16x128xf32>
    %17 = arith.negf %16 : vector<16x128xf32>
    %18 = math.exp %17 : vector<16x128xf32>
    %cst_13 = arith.constant 1.000000e+00 : f32
    %19 = vector.broadcast %cst_13 : f32 to vector<16x128xf32>
    %20 = arith.addf %19, %18 : vector<16x128xf32>
    %21 = arith.divf %19, %20 : vector<16x128xf32>
    %22 = vector.shape_cast %21 : vector<16x128xf32> to vector<8x2x128xf32>
    %c0_14 = arith.constant 0 : index
    %c0_15 = arith.constant 0 : index
    %c0_16 = arith.constant 0 : index
    %23 = vector.load %arg13[%c0_14, %c0_15, %c0_16] : memref<8x2x128xf32, #tpu.memory_space<vmem>>, vector<8x2x128xf32>
    tpu.vector_store %arg13[%c0_14, %c0_15, %c0_16], %22 {strides = array<i32>} : memref<8x2x128xf32, #tpu.memory_space<vmem>>, vector<8x2x128xf32>,
    return
  }
  func.func @transform_0(%arg0: i32, %arg1: i32) -> (i32, i32, i32) {
    %c0_i32 = arith.constant 0 : i32
    %c0_i32_0 = arith.constant 0 : i32
    %c0_i32_1 = arith.constant 0 : i32
    return %c0_i32, %arg0, %c0_i32_0 : i32, i32, i32
  }
  func.func @transform_1(%arg0: i32, %arg1: i32) -> (i32, i32) {
    %c0_i32 = arith.constant 0 : i32
    %c0_i32_0 = arith.constant 0 : i32
    %c0_i32_1 = arith.constant 0 : i32
    return %c0_i32, %c0_i32_0 : i32, i32
  }
  func.func @transform_2(%arg0: i32, %arg1: i32) -> (i32, i32) {
    %c0_i32 = arith.constant 0 : i32
    %c0_i32_0 = arith.constant 0 : i32
    %c0_i32_1 = arith.constant 0 : i32
    return %c0_i32, %c0_i32_0 : i32, i32
  }
  func.func @transform_3(%arg0: i32, %arg1: i32) -> (i32, i32) {
    %c0_i32 = arith.constant 0 : i32
    %c0_i32_0 = arith.constant 0 : i32
    %c0_i32_1 = arith.constant 0 : i32
    return %c0_i32, %c0_i32_0 : i32, i32
  }
  func.func @transform_4(%arg0: i32, %arg1: i32) -> (i32, i32) {
    %c0_i32 = arith.constant 0 : i32
    %c0_i32_0 = arith.constant 0 : i32
    %c0_i32_1 = arith.constant 0 : i32
    return %c0_i32, %c0_i32_0 : i32, i32
  }
  func.func @transform_5(%arg0: i32, %arg1: i32) -> (i32, i32) {
    %c0_i32 = arith.constant 0 : i32
    %c0_i32_0 = arith.constant 0 : i32
    %c0_i32_1 = arith.constant 0 : i32
    return %c0_i32, %c0_i32_0 : i32, i32
  }
  func.func @transform_6(%arg0: i32, %arg1: i32) -> (i32, i32) {
    %c0_i32 = arith.constant 0 : i32
    %c0_i32_0 = arith.constant 0 : i32
    %c0_i32_1 = arith.constant 0 : i32
    return %c0_i32, %c0_i32_0 : i32, i32
  }
  func.func @transform_7(%arg0: i32, %arg1: i32) -> (i32, i32) {
    %c0_i32 = arith.constant 0 : i32
    %c0_i32_0 = arith.constant 0 : i32
    %c0_i32_1 = arith.constant 0 : i32
    return %c0_i32, %c0_i32_0 : i32, i32
  }
  func.func @transform_8(%arg0: i32, %arg1: i32) -> (i32, i32) {
    %c0_i32 = arith.constant 0 : i32
    %c0_i32_0 = arith.constant 0 : i32
    return %c0_i32, %arg1 : i32, i32
  }
  func.func @transform_9(%arg0: i32, %arg1: i32) -> (i32, i32) {
    %c0_i32 = arith.constant 0 : i32
    %c0_i32_0 = arith.constant 0 : i32
    return %c0_i32, %arg1 : i32, i32
  }
  func.func @transform_10(%arg0: i32, %arg1: i32) -> (i32, i32) {
    %c0_i32 = arith.constant 0 : i32
    %c0_i32_0 = arith.constant 0 : i32
    return %c0_i32, %arg1 : i32, i32
  }
  func.func @transform_11(%arg0: i32, %arg1: i32) -> (i32, i32, i32) {
    %c0_i32 = arith.constant 0 : i32
    %c0_i32_0 = arith.constant 0 : i32
    return %c0_i32, %arg0, %arg1 : i32, i32, i32
  }
}

</mosaic_0001>

<bundles_post_ra>
// kernel: tpu_custom_call.1
= control target key start
LH: loop header
LB: loop body
LE: loop exit
PB: predicated region body
PF: predicated region fallthrough
CT: control target
= control target key end

     0   :  { %16 = vsyncpa [#allocation6], 0  ;;  %s3155_s0 = inlined_call_operand.hbm [shape: f32[8,2,32], index: 0, kind: input, shape index: {}]   ;;  %s3156_s1 = inlined_call_operand.hbm [shape: bf16[32,512], index: 1, kind: input, shape index: {}]   ;;  %s3157_s2 = inlined_call_operand.hbm [shape: f32[128,512], index: 2, kind: input, shape index: {}]   ;;  %s3158_s3 = inlined_call_operand.hbm [shape: f32[1,512], index: 3, kind: input, shape index: {}]   ;;  %s3159_s4 = inlined_call_operand.hbm [shape: bf16[128,128], index: 4, kind: input, shape index: {}]   ;;  %s3160_s5 = inlined_call_operand.vmem [shape: f32[1,128], index: 5, kind: input, shape index: {}]   ;;  %s3161_s6 = inlined_call_operand.vmem [shape: f32[1,128], index: 6, kind: input, shape index: {}]   ;;  %s3162_s7 = inlined_call_operand.vmem [shape: bf16[8,8], index: 7, kind: input, shape index: {}]   ;;  %s3163_s8 = inlined_call_operand.hbm [shape: bf16[128,128], index: 8, kind: input, shape index: {}]   ;;  %s3164_s9 = inlined_call_operand.hbm [shape: bf16[128,128], index: 9, kind: input, shape index: {}]   ;;  %s3165_s10 = inlined_call_operand.vmem [shape: f32[1,128], index: 10, kind: input, shape index: {}]   ;;  %s3166_s11 = inlined_call_operand.hbm [shape: f32[8,2,128], index: 11, kind: output, shape index: {}]  }
   0x1   :  { %17 = vsyncpa [#allocation9], 0 }
   0x2   :  { %18 = vsyncpa [#allocation12], 0 }
   0x3   :  { %19 = vsyncpa [#allocation15], 0  ;;  %s38_s19 = sshll.u32 %s3156_s1, 4  ;;  %s39_s19 = int_to_ptr.hbm [resolvable:$true] %s38_s19 }
   0x4   :  { %20 = vsyncpa [#allocation7], 0  ;;  %s2447_s20 = smov [#allocation8]   ;;  %s65_s24 = sshll.u32 %s3158_s3, 4  ;;  %s66_s24 = int_to_ptr.hbm [resolvable:$true] %s65_s24 }
   0x5   :  { %s40_s21 = sshll.u32 %s2447_s20, 4  ;;  %s2448_s25 = smov 256   ;;  %s41_s21 = int_to_ptr.vmem [resolvable:$true] %s40_s21 }
   0x6   :  { %s2449_s26 = smov 16   ;;  %s2450_s27 = smov [#allocation11]  }
   0x7   :  { %46 = dma.hbm_to_vmem [thread:$0]  %s39_s19, 1024, %s41_s21, [#allocation9], %s2448_s25, %s2448_s25, %s2449_s26  }
   0x8   :  { %s67_s28 = sshll.u32 %s2450_s27, 4  ;;  %s94_s1 = sshll.u32 %s3163_s8, 4  ;;  %s68_s28 = int_to_ptr.vmem [resolvable:$true] %s67_s28  ;;  %s95_s1 = int_to_ptr.hbm [resolvable:$true] %s94_s1 }
   0x9   :  { %70 = dma.hbm_to_vmem [thread:$0]  %s66_s24, 64, %s68_s28, [#allocation12]  }
   0xa   :  { %s2451_s12 = smov [#allocation14]   ;;  %s25_s3 = sshll.u32 %s3155_s0, 4  ;;  %s26_s3 = int_to_ptr.hbm [resolvable:$true] %s25_s3 }
   0xb   :  { %s96_s13 = sshll.u32 %s2451_s12, 4  ;;  %s2452_s16 = smov 64   ;;  %s97_s13 = int_to_ptr.vmem [resolvable:$true] %s96_s13 }
   0xc   :  { %s2453_s17 = smov 4   ;;  %s2454_s18 = smov [#allocation5]  }
   0xd   :  { %102 = dma.hbm_to_vmem [thread:$0]  %s95_s1, 1024, %s97_s13, [#allocation15], %s2452_s16, %s2452_s16, %s2453_s17  }
   0xe   :  { %s27_s19 = sshll.u32 %s2454_s18, 4  ;;  %s2455_s20 = smov 32   ;;  %s28_s19 = int_to_ptr.vmem [resolvable:$true] %s27_s19 }
   0xf   :  { %s2456_s8 = smov 2   ;;  %s51_s0 = sshll.u32 %s3157_s2, 4  ;;  %s52_s0 = int_to_ptr.hbm [resolvable:$true] %s51_s0 }
  0x10   :  { %33 = dma.hbm_to_vmem [thread:$0]  %s26_s3, 256, %s28_s19, [#allocation6], %s2455_s20, %s2455_s20, %s2456_s8  }
  0x11   :  { %s2457_s23 = smov [#allocation10]   ;;  %s2458_s25 = smov 512  }
  0x12   :  { %s53_s24 = sshll.u32 %s2457_s23, 4  ;;  %s75_s28 = sshll.u32 %s3159_s4, 4  ;;  %s54_s24 = int_to_ptr.vmem [resolvable:$true] %s53_s24  ;;  %s76_s28 = int_to_ptr.hbm [resolvable:$true] %s75_s28 }
  0x13   :  { %59 = dma.hbm_to_vmem [thread:$0]  %s52_s0, 8192, %s54_s24, [#allocation9], %s2458_s25, %s2458_s25, %s2455_s20  }
  0x14   :  { %s2459_s29 = smov [#allocation13]   ;;  %s107_s13 = sshll.u32 %s3164_s9, 4  ;;  %s108_s13 = int_to_ptr.hbm [resolvable:$true] %s107_s13 }
  0x15   :  { %s77_s30 = sshll.u32 %s2459_s29, 4  ;;  %s2460_s2 = smov [#allocation16]   ;;  %s78_s30 = int_to_ptr.vmem [resolvable:$true] %s77_s30 }
  0x16   :  { %83 = dma.hbm_to_vmem [thread:$0]  %s76_s28, 1024, %s78_s30, [#allocation12], %s2452_s16, %s2452_s16, %s2453_s17  }
  0x17   :  { %s109_s14 = sshll.u32 %s2460_s2, 4  ;;  %s110_s14 = int_to_ptr.vmem [resolvable:$true] %s109_s14 }
  0x18   :  { %115 = dma.hbm_to_vmem [thread:$0]  %s108_s13, 1024, %s110_s14, [#allocation15], %s2452_s16, %s2452_s16, %s2453_s17  }
  0x19   :  { %2425 = dma.done.wait [#allocation6], 256  }
  0x1a   :  { %2426 = vsyncadd [#allocation6], 4294967040 }
  0x1b   :  { %2427 = dma.done.wait [#allocation9], 9216  }
  0x1c   :  { %2428 = vsyncadd [#allocation9], 4294958080 }
  0x1d   :  { %2429 = dma.done.wait [#allocation12], 1088  }
  0x1e   :  { %2430 = vsyncadd [#allocation12], 4294966208 }
  0x1f   :  { %2431 = dma.done.wait [#allocation15], 2048  }
  0x20   :  { %2432 = vsyncadd [#allocation15], 4294965248  ;;  %v2562_v0 = vld [vmem:[#allocation10] sm:$0xff]  ;;  %v2564_v1 = vld [vmem:[#allocation10 + $0x8] sm:$0xff]  ;;  %vm245_vm0 = vcmask 261120   ;;  %vm319_vm1 = vcmask 1041408  }
  0x21   :  { %3216 = vst [vmem:[#allocation23_spill] sm:$0xff] %v2562_v0  ;;  %v2566_v2 = vld [vmem:[#allocation10 + $0x10] sm:$0xff]  ;;  %v2568_v3 = vld [vmem:[#allocation10 + $0x18] sm:$0xff]  ;;  %v2570_v4 = vld [vmem:[#allocation10 + $0x20] sm:$0xff]  ;;  %vm325_vm2 = vcmask 1043458   ;;  %vm321_vm3 = vcmask 1045508  }
  0x22   :  { %3217 = vst [vmem:[#allocation24_spill] sm:$0xff] %v2564_v1  ;;  %v2572_v5 = vld [vmem:[#allocation10 + $0x28] sm:$0xff]  ;;  %v2574_v6 = vld [vmem:[#allocation10 + $0x30] sm:$0xff]  ;;  %v2576_v7 = vld [vmem:[#allocation10 + $0x38] sm:$0xff]  ;;  %vm327_vm4 = vcmask 1045504   ;;  %vm323_vm5 = vcmask 1043456  }
  0x23   :  { %3218 = vst [vmem:[#allocation25_spill] sm:$0xff] %v2566_v2  ;;  %v2578_v8 = vld [vmem:[#allocation10 + $0x40] sm:$0xff]  ;;  %v2580_v9 = vld [vmem:[#allocation10 + $0x48] sm:$0xff]  ;;  %v2582_v10 = vld [vmem:[#allocation10 + $0x50] sm:$0xff]  ;;  %vm329_vm6 = vcmask 1045506   ;;  %s2718_s4 = smov 0  }
  0x24   :  { %3219 = vst [vmem:[#allocation26_spill] sm:$0xff] %v2568_v3  ;;  %v2584_v11 = vld [vmem:[#allocation10 + $0x58] sm:$0xff]  ;;  %v2586_v12 = vld [vmem:[#allocation10 + $0x60] sm:$0xff]  ;;  %v2588_v13 = vld [vmem:[#allocation10 + $0x68] sm:$0xff] }
  0x25   :  { %3220 = vst [vmem:[#allocation27_spill] sm:$0xff] %v2570_v4  ;;  %v2590_v14 = vld [vmem:[#allocation10 + $0x70] sm:$0xff]  ;;  %v2592_v15 = vld [vmem:[#allocation10 + $0x78] sm:$0xff]  ;;  %v2594_v16 = vld [vmem:[#allocation10 + $0x80] sm:$0xff] }
  0x26   :  { %3221 = vst [vmem:[#allocation28_spill] sm:$0xff] %v2572_v5  ;;  %v2596_v17 = vld [vmem:[#allocation10 + $0x88] sm:$0xff]  ;;  %v2598_v18 = vld [vmem:[#allocation10 + $0x90] sm:$0xff]  ;;  %v2600_v19 = vld [vmem:[#allocation10 + $0x98] sm:$0xff] }
  0x27   :  { %3222 = vst [vmem:[#allocation29_spill] sm:$0xff] %v2574_v6  ;;  %v2602_v20 = vld [vmem:[#allocation10 + $0xa0] sm:$0xff]  ;;  %v2604_v21 = vld [vmem:[#allocation10 + $0xa8] sm:$0xff]  ;;  %v2606_v22 = vld [vmem:[#allocation10 + $0xb0] sm:$0xff] }
  0x28   :  { %3223 = vst [vmem:[#allocation30_spill] sm:$0xff] %v2576_v7  ;;  %v2608_v23 = vld [vmem:[#allocation10 + $0xb8] sm:$0xff]  ;;  %v2610_v24 = vld [vmem:[#allocation10 + $0xc0] sm:$0xff]  ;;  %v2612_v25 = vld [vmem:[#allocation10 + $0xc8] sm:$0xff] }
  0x29   :  { %3224 = vst [vmem:[#allocation31_spill] sm:$0xff] %v2578_v8  ;;  %v2614_v26 = vld [vmem:[#allocation10 + $0xd0] sm:$0xff]  ;;  %v2616_v27 = vld [vmem:[#allocation10 + $0xd8] sm:$0xff]  ;;  %v2618_v28 = vld [vmem:[#allocation10 + $0xe0] sm:$0xff] }
  0x2a   :  { %3225 = vst [vmem:[#allocation32_spill] sm:$0xff] %v2580_v9  ;;  %v2620_v29 = vld [vmem:[#allocation10 + $0xe8] sm:$0xff]  ;;  %v2622_v30 = vld [vmem:[#allocation10 + $0xf0] sm:$0xff]  ;;  %v2624_v31 = vld [vmem:[#allocation10 + $0xf8] sm:$0xff] }
  0x2b   :  { %3226 = vst [vmem:[#allocation33_spill] sm:$0xff] %v2582_v10  ;;  %v2626_v32 = vld [vmem:[#allocation10 + $0x100] sm:$0xff]  ;;  %v2628_v33 = vld [vmem:[#allocation10 + $0x108] sm:$0xff]  ;;  %v2630_v34 = vld [vmem:[#allocation10 + $0x110] sm:$0xff] }
  0x2c   :  { %3227 = vst [vmem:[#allocation34_spill] sm:$0xff] %v2584_v11  ;;  %v2632_v35 = vld [vmem:[#allocation10 + $0x118] sm:$0xff]  ;;  %v2634_v36 = vld [vmem:[#allocation10 + $0x120] sm:$0xff]  ;;  %v2636_v37 = vld [vmem:[#allocation10 + $0x128] sm:$0xff] }
  0x2d   :  { %3228 = vst [vmem:[#allocation35_spill] sm:$0xff] %v2586_v12  ;;  %v2638_v38 = vld [vmem:[#allocation10 + $0x130] sm:$0xff]  ;;  %v2640_v39 = vld [vmem:[#allocation10 + $0x138] sm:$0xff]  ;;  %v2642_v40 = vld [vmem:[#allocation10 + $0x140] sm:$0xff] }
  0x2e   :  { %3229 = vst [vmem:[#allocation36_spill] sm:$0xff] %v2588_v13  ;;  %v2644_v41 = vld [vmem:[#allocation10 + $0x148] sm:$0xff]  ;;  %v2646_v42 = vld [vmem:[#allocation10 + $0x150] sm:$0xff]  ;;  %v2648_v43 = vld [vmem:[#allocation10 + $0x158] sm:$0xff] }
  0x2f   :  { %3230 = vst [vmem:[#allocation37_spill] sm:$0xff] %v2590_v14  ;;  %v2650_v44 = vld [vmem:[#allocation10 + $0x160] sm:$0xff]  ;;  %v2652_v45 = vld [vmem:[#allocation10 + $0x168] sm:$0xff]  ;;  %v2654_v46 = vld [vmem:[#allocation10 + $0x170] sm:$0xff] }
  0x30   :  { %3231 = vst [vmem:[#allocation38_spill] sm:$0xff] %v2592_v15  ;;  %v2656_v47 = vld [vmem:[#allocation10 + $0x178] sm:$0xff]  ;;  %v2658_v48 = vld [vmem:[#allocation10 + $0x180] sm:$0xff]  ;;  %v2660_v49 = vld [vmem:[#allocation10 + $0x188] sm:$0xff] }
  0x31   :  { %3232 = vst [vmem:[#allocation39_spill] sm:$0xff] %v2594_v16  ;;  %v2662_v50 = vld [vmem:[#allocation10 + $0x190] sm:$0xff]  ;;  %v2664_v51 = vld [vmem:[#allocation10 + $0x198] sm:$0xff]  ;;  %v2666_v52 = vld [vmem:[#allocation10 + $0x1a0] sm:$0xff] }
  0x32   :  { %3233 = vst [vmem:[#allocation40_spill] sm:$0xff] %v2596_v17  ;;  %v2668_v53 = vld [vmem:[#allocation10 + $0x1a8] sm:$0xff]  ;;  %v2670_v54 = vld [vmem:[#allocation10 + $0x1b0] sm:$0xff]  ;;  %v2672_v55 = vld [vmem:[#allocation10 + $0x1b8] sm:$0xff] }
  0x33   :  { %3234 = vst [vmem:[#allocation41_spill] sm:$0xff] %v2598_v18  ;;  %v2674_v56 = vld [vmem:[#allocation10 + $0x1c0] sm:$0xff]  ;;  %v2676_v57 = vld [vmem:[#allocation10 + $0x1c8] sm:$0xff]  ;;  %v2678_v58 = vld [vmem:[#allocation10 + $0x1d0] sm:$0xff] }
  0x34   :  { %3235 = vst [vmem:[#allocation42_spill] sm:$0xff] %v2600_v19  ;;  %v2680_v59 = vld [vmem:[#allocation10 + $0x1d8] sm:$0xff]  ;;  %v2682_v60 = vld [vmem:[#allocation10 + $0x1e0] sm:$0xff]  ;;  %v2684_v61 = vld [vmem:[#allocation10 + $0x1e8] sm:$0xff] }
  0x35   :  { %3236 = vst [vmem:[#allocation43_spill] sm:$0xff] %v2602_v20  ;;  %v2686_v62 = vld [vmem:[#allocation10 + $0x1f0] sm:$0xff]  ;;  %v2688_v63 = vld [vmem:[#allocation10 + $0x1f8] sm:$0xff]  ;;  %v1920_v0 = vld [vmem:[#allocation8 + $0x20] sm:$0xf] }
  0x36   :  { %3237 = vst [vmem:[#allocation44_spill] sm:$0xff] %v2604_v21  ;;  %v2073_v1 = vld [vmem:[#allocation8 + $0x2c] sm:$0xf0]  ;;  %v2071_v2 = vld [vmem:[#allocation8 + $0x24] sm:$0xf] }
  0x37   :  { %3238 = vst [vmem:[#allocation45_spill] sm:$0xff] %v2606_v22  ;;  %v1921_v3 = vor.u32 %v2073_v1, %v1920_v0  ;;  %v1922_v4 = vld [vmem:[#allocation8 + $0x30] sm:$0xf0]  ;;  %v1928_v5 = vld [vmem:[#allocation8 + $0x28] sm:$0xf] }
  0x38   :  { %3239 = vst [vmem:[#allocation46_spill] sm:$0xff] %v2608_v23  ;;  %v1925_v7 = vor.u32 %v2071_v2, %v1922_v4  ;;  %v2074_v6 = vld [vmem:[#allocation8 + $0x34] sm:$0xf0]  ;;  %v2072_v8 = vld [vmem:[#allocation8 + $0x2c] sm:$0xf] }
  0x39   :  { %3240 = vst [vmem:[#allocation47_spill] sm:$0xff] %v2610_v24  ;;  %v1930_v9 = vld [vmem:[#allocation8 + $0x38] sm:$0xf0]  ;;  %255 = vmatpush.bf16.msra.mxu0 %v1921_v3  ;;  %v1929_v11 = vor.u32 %v2074_v6, %v1928_v5  ;;  %v1904_v12 = vld [vmem:[#allocation8] sm:$0xf] }
  0x3a   :  { %3241 = vst [vmem:[#allocation48_spill] sm:$0xff] %v2612_v25  ;;  %v1933_v10 = vor.u32 %v2072_v8, %v1930_v9  ;;  %v2069_v13 = vld [vmem:[#allocation8 + $0xc] sm:$0xf0]  ;;  %v2067_v15 = vld [vmem:[#allocation8 + $0x4] sm:$0xf]  ;;  %269 = vmatpush.bf16.msra.mxu1 %v1925_v7 }
  0x3b   :  { %3242 = vst [vmem:[#allocation49_spill] sm:$0xff] %v2616_v27  ;;  %v1905_v14 = vor.u32 %v2069_v13, %v1904_v12  ;;  %v1906_v16 = vld [vmem:[#allocation8 + $0x10] sm:$0xf0]  ;;  %v1912_v17 = vld [vmem:[#allocation8 + $0x8] sm:$0xf]  ;;  %283 = vmatpush.bf16.msra.mxu2 %v1929_v11 }
  0x3c   :  { %3243 = vst [vmem:[#allocation50_spill] sm:$0xff] %v2618_v28  ;;  %v2070_v19 = vld [vmem:[#allocation8 + $0x14] sm:$0xf0]  ;;  %297 = vmatpush.bf16.msra.mxu3 %v1933_v10  ;;  %v1909_v0 = vor.u32 %v2067_v15, %v1906_v16  ;;  %v2068_v18 = vld [vmem:[#allocation8 + $0xc] sm:$0xf] }
  0x3d   :  { %3244 = vst [vmem:[#allocation51_spill] sm:$0xff] %v2620_v29  ;;  %v1913_v1 = vor.u32 %v2070_v19, %v1912_v17  ;;  %v1914_v2 = vld [vmem:[#allocation8 + $0x18] sm:$0xf0]  ;;  %v151_v4 = vld [vmem:[#allocation5] sm:$0x3]  ;;  %256 = vmatpush.bf16.msra.mxu0 %v1905_v14 }
  0x3e   :  { %v1917_v20 = vor.u32 %v2068_v18, %v1914_v2  ;;  %v152_v21 = vld [vmem:[#allocation5 + $0x2] sm:$0x3]  ;;  %v153_v3 = vld [vmem:[#allocation5 + $0x4] sm:$0x3]  ;;  %270 = vmatpush.bf16.msra.mxu1 %v1909_v0  ;;  %v154_v5 = vld [vmem:[#allocation5 + $0x6] sm:$0x3] }
  0x3f   :  { %167 = vst [vmem:[#allocation1] ss:$4 sm:$0xff] %v151_v4  ;;  %284 = vmatpush.bf16.msra.mxu2 %v1913_v1  ;;  %v155_v6 = vld [vmem:[#allocation5 + $0x8] sm:$0x3]  ;;  %v156_v7 = vld [vmem:[#allocation5 + $0xa] sm:$0x3] }
  0x40   :  { %298 = vmatpush.bf16.msra.mxu3 %v1917_v20  ;;  %169 = vst [vmem:[#allocation1 + $0x1] ss:$4 sm:$0xff] %v152_v21  ;;  %v157_v8 = vld [vmem:[#allocation5 + $0xc] sm:$0x3]  ;;  %v158_v9 = vld [vmem:[#allocation5 + $0xe] sm:$0x3] }
  0x41   :  { %171 = vst [vmem:[#allocation1 + $0x2] ss:$4 sm:$0xff] %v153_v3  ;;  %v195_v13 = vld [vmem:[#allocation11] sm:$0xf] }
  0x42   :  { %173 = vst [vmem:[#allocation1 + $0x3] ss:$4 sm:$0xff] %v154_v5  ;;  %v198_v14 = vperm.slane %v195_v13, 1  ;;  %v197_v16 = vperm.slane %v195_v13, 0  ;;  %v199_v19 = vperm.slane %v195_v13, 2  ;;  %v200_v20 = vperm.slane %v195_v13, 3 }
  0x43   :  { %175 = vst [vmem:[#allocation1 + $0x20] ss:$4 sm:$0xff] %v155_v6 }
  0x44   :  { %177 = vst [vmem:[#allocation1 + $0x21] ss:$4 sm:$0xff] %v156_v7 }
  0x45   :  { %179 = vst [vmem:[#allocation1 + $0x22] ss:$4 sm:$0xff] %v157_v8 }
  0x46   :  { %181 = vst [vmem:[#allocation1 + $0x23] ss:$4 sm:$0xff] %v158_v9 }
  0x49   :  { %v182_v10 = vld.sshfl [vmem:[#allocation1] sm:$0xff pattern:$0x73625140] }
  0x4d   :  { %v183_v11 = vld.sshfl [vmem:[#allocation1 + $0x20] sm:$0xff pattern:$0x73625140] }
  0x4e   :  { %v186_v12 = vpack.c.bf16 %v183_v11, %v182_v10 }
  0x50   :  { %1934 = vmatmul.msk.bf16.vlgmr.msra.gmra.mxu0 %vm245_vm0, %v186_v12  ;;  %1935 = vmatmul.msk.bf16.vlgmr.msra.gmra.mxu1 %vm245_vm0, %v186_v12 }
  0x51   :  { %1936 = vmatmul.msk.bf16.vlgmr.msra.gmra.mxu2 %vm245_vm0, %v186_v12  ;;  %1937 = vmatmul.msk.bf16.vlgmr.msra.gmra.mxu3 %vm245_vm0, %v186_v12 }
  0xcd   :  { %v272_v15 = vpop.f32.mrf.mxu1  ;;  %v258_v18 = vpop.f32.mrf.mxu0 }
  0xce   :  { %v273_v17 = vadd.f32 %v272_v15, %v198_v14  ;;  %v259_v21 = vadd.f32 %v258_v18, %v197_v16 }
  0xd0   :  { %v313_v0 = vrot.slane %v273_v17, 6 }
  0xd2   :  { %v320_v6 = vsel %vm319_vm1, %v259_v21, %v313_v0  ;;  %v326_v7 = vsel %vm325_vm2, %v259_v21, %v313_v0  ;;  %v332_v8 = vsel %vm321_vm3, %v259_v21, %v313_v0  ;;  %v336_v9 = vsel %vm327_vm4, %v313_v0, %v259_v21 }
  0xd4   :  { %v286_v1 = vpop.f32.mrf.mxu2  ;;  %v300_v2 = vpop.f32.mrf.mxu3 }
  0xd5   :  { %v287_v4 = vadd.f32 %v286_v1, %v199_v19  ;;  %v301_v3 = vadd.f32 %v300_v2, %v200_v20  ;;  %v274_v5 = vpop.f32.mrf.mxu1 }
  0xd6   :  { %v275_v12 = vadd.f32 %v274_v5, %v198_v14  ;;  %v260_v14 = vpop.f32.mrf.mxu0 }
  0xd7   :  { %v314_v10 = vrot.slane %v287_v4, 4  ;;  %v315_v11 = vrot.slane %v301_v3, 2 }
  0xd8   :  { %v316_v3 = vrot.slane %v275_v12, 6 }
  0xd9   :  { %v322_v13 = vsel %vm321_vm3, %v314_v10, %v315_v11  ;;  %v328_v15 = vsel %vm327_vm4, %v315_v11, %v314_v10  ;;  %v333_v17 = vsel %vm319_vm1, %v314_v10, %v315_v11  ;;  %v337_v18 = vsel %vm325_vm2, %v314_v10, %v315_v11 }
  0xda   :  { %v324_v1 = vsel %vm323_vm5, %v320_v6, %v322_v13  ;;  %v330_v2 = vsel %vm329_vm6, %v326_v7, %v328_v15  ;;  %v334_v23 = vsel %vm323_vm5, %v333_v17, %v332_v8  ;;  %v338_v22 = vsel %vm329_vm6, %v337_v18, %v336_v9 }
  0xdb   :  { %v331_v21 = vrot.slane %v330_v2, 2  ;;  %v335_v0 = vrot.slane %v334_v23, 4  ;;  %v339_v4 = vrot.slane %v338_v22, 6  ;;  %363 = vst [vmem:[#allocation2] sm:$0xff] %v324_v1  ;;  %v261_v10 = vadd.f32 %v260_v14, %v197_v16 }
  0xdc   :  { %v288_v5 = vpop.f32.mrf.mxu2  ;;  %v302_v24 = vpop.f32.mrf.mxu3  ;;  %v2714_v18 = vmov 0.0   ;;  %v2716_v1 = vmov 0.0  }
  0xdd   :  { %364 = vst [vmem:[#allocation2 + $0x8] sm:$0xff] %v331_v21  ;;  %v289_v25 = vadd.f32 %v288_v5, %v199_v19  ;;  %v303_v27 = vadd.f32 %v302_v24, %v200_v20  ;;  %v340_v8 = vsel %vm319_vm1, %v261_v10, %v316_v3  ;;  %v343_v9 = vsel %vm325_vm2, %v261_v10, %v316_v3 }
  0xde   :  { %365 = vst [vmem:[#allocation2 + $0x10] sm:$0xff] %v335_v0  ;;  %v347_v23 = vsel %vm321_vm3, %v261_v10, %v316_v3  ;;  %v351_v22 = vsel %vm327_vm4, %v316_v3, %v261_v10 }
  0xdf   :  { %366 = vst [vmem:[#allocation2 + $0x18] sm:$0xff] %v339_v4  ;;  %v317_v6 = vrot.slane %v289_v25, 4  ;;  %v318_v7 = vrot.slane %v303_v27, 2 }
  0xe1   :  { %v341_v11 = vsel %vm321_vm3, %v317_v6, %v318_v7  ;;  %v344_v12 = vsel %vm327_vm4, %v318_v7, %v317_v6  ;;  %v348_v19 = vsel %vm319_vm1, %v317_v6, %v318_v7  ;;  %v352_v24 = vsel %vm325_vm2, %v317_v6, %v318_v7 }
  0xe2   :  { %v342_v16 = vsel %vm323_vm5, %v340_v8, %v341_v11  ;;  %v345_v25 = vsel %vm329_vm6, %v343_v9, %v344_v12  ;;  %v349_v27 = vsel %vm323_vm5, %v348_v19, %v347_v23  ;;  %v353_v20 = vsel %vm329_vm6, %v352_v24, %v351_v22 }
  0xe3   :  { %v346_v13 = vrot.slane %v345_v25, 2  ;;  %v350_v15 = vrot.slane %v349_v27, 4  ;;  %v354_v17 = vrot.slane %v353_v20, 6  ;;  %367 = vst [vmem:[#allocation2 + $0x20] sm:$0xff] %v342_v16 }
  0xe5   :  { %368 = vst [vmem:[#allocation2 + $0x28] sm:$0xff] %v346_v13 }
  0xe6   :  { %369 = vst [vmem:[#allocation2 + $0x30] sm:$0xff] %v350_v15 }
  0xe7   :  { %370 = vst [vmem:[#allocation2 + $0x38] sm:$0xff] %v354_v17 }
  0xe8 LB: > { %v3245_v29 = vld [vmem:[#allocation51_spill] sm:$0xff]  ;;  %v3246_v28 = vld [vmem:[#allocation50_spill] sm:$0xff]  ;;  %3247 = vst [vmem:[#allocation52_spill] sm:$0xff] %v2437_v18  ;;  %488 = vmatpush.msra.mxu2 %v2686_v62  ;;  %508 = vmatpush.msra.mxu3 %v2688_v63  ;;  %v3248_v2 = vld [vmem:[#allocation49_spill] sm:$0xff]  ;;  %s2076_s9 = sshll.u32 %s2445_s4, 5  ;;  %s2077_s3 = sshll.u32 %s2445_s4, 3  ;;  %v2441_v1 = vphi %v2716_v1, %v971_v1   ;;  %v2437_v18 = vphi %v2714_v18, %v967_v18   ;;  %s2445_s4 = sphi %s2718_s4, %s440_s4  }
  0xe9   : > { %468 = vmatpush.msra.mxu1 %v2684_v61  ;;  %448 = vmatpush.msra.mxu0 %v2682_v60  ;;  %v3249_v21 = vld [vmem:[#allocation48_spill] sm:$0xff]  ;;  %v3250_v0 = vld [vmem:[#allocation47_spill] sm:$0xff]  ;;  %v3251_v4 = vld [vmem:[#allocation45_spill] sm:$0xff]  ;;  %s2927_s15 = scalar_lea.vmem [#allocation2], %s2076_s9  ;;  %s2937_s16 = scalar_lea.vmem [#allocation3], %s2077_s3 }
  0xea   : > { %489 = vmatpush.msra.mxu2 %v2678_v58  ;;  %509 = vmatpush.msra.mxu3 %v2680_v59  ;;  %v3252_v14 = vld [vmem:[#allocation46_spill] sm:$0xff]  ;;  %v3253_v3 = vld [vmem:[#allocation44_spill] sm:$0xff]  ;;  %v3254_v5 = vld [vmem:[#allocation43_spill] sm:$0xff]  ;;  %s440_s4 = sadd.s32 1, %s2445_s4  }
  0xeb   : > { %469 = vmatpush.msra.mxu1 %v2676_v57  ;;  %449 = vmatpush.msra.mxu0 %v2674_v56  ;;  %v3255_v10 = vld [vmem:[#allocation41_spill] sm:$0xff]  ;;  %v3256_v6 = vld [vmem:[#allocation42_spill] sm:$0xff]  ;;  %v3257_v7 = vld [vmem:[#allocation40_spill] sm:$0xff]  ;;  %p437_p0 = scmp.ge.s32.totalorder %s440_s4, 2  }
  0xec   : > { %490 = vmatpush.msra.mxu2 %v2670_v54  ;;  %510 = vmatpush.msra.mxu3 %v2672_v55  ;;  %v3258_v8 = vld [vmem:[#allocation39_spill] sm:$0xff]  ;;  %v3259_v9 = vld [vmem:[#allocation37_spill] sm:$0xff]  ;;  %v3260_v23 = vld [vmem:[#allocation38_spill] sm:$0xff]  ;;  %s1847_s25 = sshll.u32 (%p437_p0), %s3166_s11, 4  ;;  %s1848_s25 = int_to_ptr.hbm [resolvable:$true] %s1847_s25 }
  0xed   : > { %470 = vmatpush.msra.mxu1 %v2668_v53  ;;  %450 = vmatpush.msra.mxu0 %v2666_v52  ;;  %v3261_v22 = vld [vmem:[#allocation36_spill] sm:$0xff]  ;;  %v3262_v11 = vld [vmem:[#allocation35_spill] sm:$0xff]  ;;  %v3263_v12 = vld [vmem:[#allocation33_spill] sm:$0xff] }
  0xee   : > { %491 = vmatpush.msra.mxu2 %v2662_v50  ;;  %511 = vmatpush.msra.mxu3 %v2664_v51  ;;  %v3264_v19 = vld [vmem:[#allocation34_spill] sm:$0xff]  ;;  %v3265_v24 = vld [vmem:[#allocation32_spill] sm:$0xff]  ;;  %v3266_v16 = vld [vmem:[#allocation31_spill] sm:$0xff] }
  0xef   : > { %471 = vmatpush.msra.mxu1 %v2660_v49  ;;  %451 = vmatpush.msra.mxu0 %v2658_v48  ;;  %v3267_v25 = vld [vmem:[#allocation29_spill] sm:$0xff]  ;;  %v3268_v27 = vld [vmem:[#allocation30_spill] sm:$0xff]  ;;  %v3269_v20 = vld [vmem:[#allocation28_spill] sm:$0xff] }
  0xf0   : > { %492 = vmatpush.msra.mxu2 %v2654_v46  ;;  %512 = vmatpush.msra.mxu3 %v2656_v47  ;;  %v3270_v13 = vld [vmem:[#allocation27_spill] sm:$0xff]  ;;  %v3271_v15 = vld [vmem:[#allocation25_spill] sm:$0xff]  ;;  %v3272_v17 = vld [vmem:[#allocation26_spill] sm:$0xff] }
  0xf1   : > { %472 = vmatpush.msra.mxu1 %v2652_v45  ;;  %452 = vmatpush.msra.mxu0 %v2650_v44  ;;  %v3273_v18 = vld [vmem:[#allocation24_spill] sm:$0xff] }
  0xf2   : > { %493 = vmatpush.msra.mxu2 %v2646_v42  ;;  %513 = vmatpush.msra.mxu3 %v2648_v43 }
  0xf3   : > { %473 = vmatpush.msra.mxu1 %v2644_v41  ;;  %453 = vmatpush.msra.mxu0 %v2642_v40 }
  0xf4   : > { %494 = vmatpush.msra.mxu2 %v2638_v38  ;;  %514 = vmatpush.msra.mxu3 %v2640_v39 }
  0xf5   : > { %474 = vmatpush.msra.mxu1 %v2636_v37  ;;  %454 = vmatpush.msra.mxu0 %v2634_v36 }
  0xf6   : > { %495 = vmatpush.msra.mxu2 %v2630_v34  ;;  %515 = vmatpush.msra.mxu3 %v2632_v35 }
  0xf7   : > { %475 = vmatpush.msra.mxu1 %v2628_v33  ;;  %455 = vmatpush.msra.mxu0 %v2626_v32 }
  0xf8   : > { %496 = vmatpush.msra.mxu2 %v2622_v30  ;;  %516 = vmatpush.msra.mxu3 %v2624_v31 }
  0xf9   : > { %476 = vmatpush.msra.mxu1 %v3245_v29  ;;  %456 = vmatpush.msra.mxu0 %v3246_v28 }
  0xfa   : > { %497 = vmatpush.msra.mxu2 %v2614_v26  ;;  %517 = vmatpush.msra.mxu3 %v3248_v2 }
  0xfb   : > { %477 = vmatpush.msra.mxu1 %v3249_v21  ;;  %457 = vmatpush.msra.mxu0 %v3250_v0 }
  0xfc   : > { %498 = vmatpush.msra.mxu2 %v3251_v4  ;;  %518 = vmatpush.msra.mxu3 %v3252_v14 }
  0xfd   : > { %478 = vmatpush.msra.mxu1 %v3253_v3  ;;  %458 = vmatpush.msra.mxu0 %v3254_v5 }
  0xfe   : > { %499 = vmatpush.msra.mxu2 %v3255_v10  ;;  %519 = vmatpush.msra.mxu3 %v3256_v6 }
  0xff   : > { %479 = vmatpush.msra.mxu1 %v3257_v7  ;;  %459 = vmatpush.msra.mxu0 %v3258_v8 }
 0x100   : > { %500 = vmatpush.msra.mxu2 %v3259_v9  ;;  %520 = vmatpush.msra.mxu3 %v3260_v23 }
 0x101   : > { %480 = vmatpush.msra.mxu1 %v3261_v22  ;;  %460 = vmatpush.msra.mxu0 %v3262_v11 }
 0x102   : > { %501 = vmatpush.msra.mxu2 %v3263_v12  ;;  %521 = vmatpush.msra.mxu3 %v3264_v19  ;;  %v3274_v19 = vmov %v3273_v18  ;;  %v3275_v12 = vld [vmem:[#allocation23_spill] sm:$0xff] }
 0x103   : > { %481 = vmatpush.msra.mxu1 %v3265_v24  ;;  %461 = vmatpush.msra.mxu0 %v3266_v16 }
 0x104   : > { %502 = vmatpush.msra.mxu2 %v3267_v25  ;;  %522 = vmatpush.msra.mxu3 %v3268_v27 }
 0x105   : > { %482 = vmatpush.msra.mxu1 %v3269_v20  ;;  %462 = vmatpush.msra.mxu0 %v3270_v13 }
 0x106   : > { %503 = vmatpush.msra.mxu2 %v3271_v15  ;;  %523 = vmatpush.msra.mxu3 %v3272_v17 }
 0x107   : > { %504 = vmatmul.f32.vlgmr.msra.gmra.mxu2 %v2441_v1  ;;  %524 = vmatmul.f32.vlgmr.msra.gmra.mxu3 %v2441_v1 }
 0x108   : > { %483 = vmatpush.msra.mxu1 %v3273_v18  ;;  %463 = vmatpush.msra.mxu0 %v3275_v12  ;;  %v3276_v18 = vld [vmem:[#allocation33_spill] sm:$0xff] }
 0x109   : > { %484 = vmatmul.f32.vlgmr.msra.gmra.mxu1 %v2441_v1  ;;  %464 = vmatmul.f32.vlgmr.msra.gmra.mxu0 %v2441_v1  ;;  %v3278_v1 = vld [vmem:[#allocation34_spill] sm:$0xff] }
 0x10a   : > { %581 = vmatpush.msrb.mxu0 %v2682_v60  ;;  %601 = vmatpush.msrb.mxu1 %v2684_v61 }
 0x10b   : > { %621 = vmatpush.msrb.mxu2 %v2686_v62  ;;  %641 = vmatpush.msrb.mxu3 %v2688_v63 }
 0x10c   : > { %582 = vmatpush.msrb.mxu0 %v2674_v56  ;;  %602 = vmatpush.msrb.mxu1 %v2676_v57 }
 0x10d   : > { %622 = vmatpush.msrb.mxu2 %v2678_v58  ;;  %642 = vmatpush.msrb.mxu3 %v2680_v59 }
 0x10e   : > { %583 = vmatpush.msrb.mxu0 %v2666_v52  ;;  %603 = vmatpush.msrb.mxu1 %v2668_v53 }
 0x10f   : > { %623 = vmatpush.msrb.mxu2 %v2670_v54  ;;  %643 = vmatpush.msrb.mxu3 %v2672_v55 }
 0x110   : > { %584 = vmatpush.msrb.mxu0 %v2658_v48  ;;  %604 = vmatpush.msrb.mxu1 %v2660_v49 }
 0x111   : > { %624 = vmatpush.msrb.mxu2 %v2662_v50  ;;  %644 = vmatpush.msrb.mxu3 %v2664_v51 }
 0x112   : > { %585 = vmatpush.msrb.mxu0 %v2650_v44  ;;  %605 = vmatpush.msrb.mxu1 %v2652_v45 }
 0x113   : > { %625 = vmatpush.msrb.mxu2 %v2654_v46  ;;  %645 = vmatpush.msrb.mxu3 %v2656_v47 }
 0x114   : > { %586 = vmatpush.msrb.mxu0 %v2642_v40  ;;  %606 = vmatpush.msrb.mxu1 %v2644_v41 }
 0x115   : > { %626 = vmatpush.msrb.mxu2 %v2646_v42  ;;  %646 = vmatpush.msrb.mxu3 %v2648_v43 }
 0x116   : > { %587 = vmatpush.msrb.mxu0 %v2634_v36  ;;  %607 = vmatpush.msrb.mxu1 %v2636_v37 }
 0x117   : > { %627 = vmatpush.msrb.mxu2 %v2638_v38  ;;  %647 = vmatpush.msrb.mxu3 %v2640_v39 }
 0x118   : > { %588 = vmatpush.msrb.mxu0 %v2626_v32  ;;  %608 = vmatpush.msrb.mxu1 %v2628_v33 }
 0x119   : > { %628 = vmatpush.msrb.mxu2 %v2630_v34  ;;  %648 = vmatpush.msrb.mxu3 %v2632_v35 }
 0x11a   : > { %589 = vmatpush.msrb.mxu0 %v3246_v28  ;;  %609 = vmatpush.msrb.mxu1 %v3245_v29 }
 0x11b   : > { %629 = vmatpush.msrb.mxu2 %v2622_v30  ;;  %649 = vmatpush.msrb.mxu3 %v2624_v31 }
 0x11c   : > { %590 = vmatpush.msrb.mxu0 %v3250_v0  ;;  %610 = vmatpush.msrb.mxu1 %v3249_v21 }
 0x11d   : > { %630 = vmatpush.msrb.mxu2 %v2614_v26  ;;  %650 = vmatpush.msrb.mxu3 %v3248_v2 }
 0x11e   : > { %591 = vmatpush.msrb.mxu0 %v3254_v5  ;;  %611 = vmatpush.msrb.mxu1 %v3253_v3 }
 0x11f   : > { %631 = vmatpush.msrb.mxu2 %v3251_v4  ;;  %651 = vmatpush.msrb.mxu3 %v3252_v14  ;;  %v3277_v14 = vmov %v3276_v18 }
 0x120   : > { %592 = vmatpush.msrb.mxu0 %v3258_v8  ;;  %612 = vmatpush.msrb.mxu1 %v3257_v7  ;;  %v3279_v8 = vmov %v3278_v1 }
 0x121   : > { %632 = vmatpush.msrb.mxu2 %v3255_v10  ;;  %652 = vmatpush.msrb.mxu3 %v3256_v6 }
 0x122   : > { %593 = vmatpush.msrb.mxu0 %v3262_v11  ;;  %613 = vmatpush.msrb.mxu1 %v3261_v22 }
 0x123   : > { %633 = vmatpush.msrb.mxu2 %v3259_v9  ;;  %653 = vmatpush.msrb.mxu3 %v3260_v23 }
 0x124   : > { %594 = vmatpush.msrb.mxu0 %v3266_v16  ;;  %614 = vmatpush.msrb.mxu1 %v3265_v24 }
 0x125   : > { %634 = vmatpush.msrb.mxu2 %v3276_v18  ;;  %654 = vmatpush.msrb.mxu3 %v3278_v1  ;;  %v3280_v18 = vld [vmem:[#allocation46_spill] sm:$0xff]  ;;  %v3282_v1 = vld [vmem:[#allocation39_spill] sm:$0xff] }
 0x126   : > { %595 = vmatpush.msrb.mxu0 %v3270_v13  ;;  %615 = vmatpush.msrb.mxu1 %v3269_v20 }
 0x127   : > { %635 = vmatpush.msrb.mxu2 %v3267_v25  ;;  %655 = vmatpush.msrb.mxu3 %v3268_v27 }
 0x128   : > { %596 = vmatpush.msrb.mxu0 %v3275_v12  ;;  %616 = vmatpush.msrb.mxu1 %v3274_v19 }
 0x129   : > { %636 = vmatpush.msrb.mxu2 %v3271_v15  ;;  %656 = vmatpush.msrb.mxu3 %v3272_v17 }
 0x12a   : > { %714 = vmatpush.msra.mxu0 %v2682_v60  ;;  %734 = vmatpush.msra.mxu1 %v2684_v61 }
 0x12b   : > { %754 = vmatpush.msra.mxu2 %v2686_v62  ;;  %774 = vmatpush.msra.mxu3 %v2688_v63 }
 0x12c   : > { %715 = vmatpush.msra.mxu0 %v2674_v56  ;;  %735 = vmatpush.msra.mxu1 %v2676_v57 }
 0x12d   : > { %755 = vmatpush.msra.mxu2 %v2678_v58  ;;  %775 = vmatpush.msra.mxu3 %v2680_v59 }
 0x12e   : > { %716 = vmatpush.msra.mxu0 %v2666_v52  ;;  %736 = vmatpush.msra.mxu1 %v2668_v53 }
 0x12f   : > { %756 = vmatpush.msra.mxu2 %v2670_v54  ;;  %776 = vmatpush.msra.mxu3 %v2672_v55 }
 0x130   : > { %717 = vmatpush.msra.mxu0 %v2658_v48  ;;  %737 = vmatpush.msra.mxu1 %v2660_v49 }
 0x131   : > { %757 = vmatpush.msra.mxu2 %v2662_v50  ;;  %777 = vmatpush.msra.mxu3 %v2664_v51 }
 0x132   : > { %718 = vmatpush.msra.mxu0 %v2650_v44  ;;  %738 = vmatpush.msra.mxu1 %v2652_v45 }
 0x133   : > { %758 = vmatpush.msra.mxu2 %v2654_v46  ;;  %778 = vmatpush.msra.mxu3 %v2656_v47 }
 0x134   : > { %719 = vmatpush.msra.mxu0 %v2642_v40  ;;  %739 = vmatpush.msra.mxu1 %v2644_v41 }
 0x135   : > { %759 = vmatpush.msra.mxu2 %v2646_v42  ;;  %779 = vmatpush.msra.mxu3 %v2648_v43 }
 0x136   : > { %720 = vmatpush.msra.mxu0 %v2634_v36  ;;  %740 = vmatpush.msra.mxu1 %v2636_v37 }
 0x137   : > { %760 = vmatpush.msra.mxu2 %v2638_v38  ;;  %780 = vmatpush.msra.mxu3 %v2640_v39 }
 0x138   : > { %721 = vmatpush.msra.mxu0 %v2626_v32  ;;  %741 = vmatpush.msra.mxu1 %v2628_v33 }
 0x139   : > { %761 = vmatpush.msra.mxu2 %v2630_v34  ;;  %781 = vmatpush.msra.mxu3 %v2632_v35 }
 0x13a   : > { %722 = vmatpush.msra.mxu0 %v3246_v28  ;;  %742 = vmatpush.msra.mxu1 %v3245_v29  ;;  %v3281_v28 = vmov %v3280_v18  ;;  %v3283_v29 = vmov %v3282_v1 }
 0x13b   : > { %762 = vmatpush.msra.mxu2 %v2622_v30  ;;  %782 = vmatpush.msra.mxu3 %v2624_v31 }
 0x13c   : > { %723 = vmatpush.msra.mxu0 %v3250_v0  ;;  %743 = vmatpush.msra.mxu1 %v3249_v21 }
 0x13d   : > { %763 = vmatpush.msra.mxu2 %v2614_v26  ;;  %783 = vmatpush.msra.mxu3 %v3248_v2 }
 0x13e   : > { %724 = vmatpush.msra.mxu0 %v3254_v5  ;;  %744 = vmatpush.msra.mxu1 %v3253_v3 }
 0x13f   : > { %764 = vmatpush.msra.mxu2 %v3251_v4  ;;  %784 = vmatpush.msra.mxu3 %v3280_v18 }
 0x140   : > { %725 = vmatpush.msra.mxu0 %v3282_v1  ;;  %745 = vmatpush.msra.mxu1 %v3257_v7 }
 0x141   : > { %765 = vmatpush.msra.mxu2 %v3255_v10  ;;  %785 = vmatpush.msra.mxu3 %v3256_v6 }
 0x142   : > { %726 = vmatpush.msra.mxu0 %v3262_v11  ;;  %746 = vmatpush.msra.mxu1 %v3261_v22 }
 0x143   : > { %766 = vmatpush.msra.mxu2 %v3259_v9  ;;  %786 = vmatpush.msra.mxu3 %v3260_v23 }
 0x144   : > { %727 = vmatpush.msra.mxu0 %v3266_v16  ;;  %747 = vmatpush.msra.mxu1 %v3265_v24 }
 0x145   : > { %767 = vmatpush.msra.mxu2 %v3277_v14  ;;  %787 = vmatpush.msra.mxu3 %v3279_v8 }
 0x146   : > { %728 = vmatpush.msra.mxu0 %v3270_v13  ;;  %748 = vmatpush.msra.mxu1 %v3269_v20 }
 0x147   : > { %768 = vmatpush.msra.mxu2 %v3267_v25  ;;  %788 = vmatpush.msra.mxu3 %v3268_v27 }
 0x148   : > { %729 = vmatpush.msra.mxu0 %v3275_v12  ;;  %749 = vmatpush.msra.mxu1 %v3274_v19  ;;  %v447_v12 = vld [vmem:[%s2927_s15] sm:$0xff] }
 0x149   : > { %769 = vmatpush.msra.mxu2 %v3271_v15  ;;  %789 = vmatpush.msra.mxu3 %v3272_v17 }
 0x186   : > { %v485_v18 = vpop.f32.mrf.mxu1  ;;  %v465_v8 = vpop.f32.mrf.mxu0 }
 0x187   : > { %v532_v1 = vrot.slane %v485_v18, 6 }
 0x189   : > { %v535_v25 = vsel %vm319_vm1, %v465_v8, %v532_v1 }
 0x18a   : > { %v505_v14 = vpop.f32.mrf.mxu2  ;;  %v525_v13 = vpop.f32.mrf.mxu3 }
 0x18b   : > { %v533_v24 = vrot.slane %v505_v14, 4  ;;  %v534_v20 = vrot.slane %v525_v13, 2 }
 0x18d   : > { %v536_v19 = vsel %vm321_vm3, %v533_v24, %v534_v20  ;;  %v3284_v20 = vld [vmem:[#allocation52_spill] sm:$0xff] }
 0x18e   : > { %v537_v15 = vsel %vm323_vm5, %v535_v25, %v536_v19 }
 0x18f   : > { %v539_v27 = vadd.f32 %v537_v15, %v447_v12 }
 0x191   : > { %v1941_v17 = vmul.f32 -1.442695, %v539_v27  ;;  %v560_v14 = vrot.slane %v539_v27, 6 }
 0x193   : > { %2153 = vpow2.f32 %v1941_v17 }
 0x199   : > { %v2154_v16 = vpop.eup %2153 }
 0x19a   : > { %v543_v18 = vadd.f32 1.0, %v2154_v16 }
 0x19c   : > { %2155 = vrcp.f32 %v543_v18  ;;  %v555_v22 = vand.u32 2147483648, %v543_v18  ;;  %v553_v1 = vand.u32 2147483647, %v543_v18  ;;  %vm549_vm8 = vweird.f32 %v543_v18 }
 0x19d   : > { %2157 = vtanh.f32 %v560_v14 }
 0x19e   : > { %v556_v19 = vor.u32 1.1754944e-38, %v555_v22  ;;  %vm554_vm10 = vcmp.eq.f32.partialorder %v553_v1, 8.507059e+37  ;;  %v3286_v22 = vld [vmem:[#allocation51_spill] sm:$0xff]  ;;  %v3290_v1 = vld [vmem:[#allocation38_spill] sm:$0xff] }
 0x1a2   : > { %v2156_v23 = vpop.eup %2155 }
 0x1a3   : > { %v545_v9 = vmul.f32 %v2156_v23, %v543_v18  ;;  %vm550_vm7 = vweird.f32 %v2156_v23  ;;  %v2158_v16 = vpop.eup %2157  ;;  %v3288_v18 = vld [vmem:[#allocation36_spill] sm:$0xff] }
 0x1a4   : > { %vm551_vm9 = vmor %vm549_vm8, %vm550_vm7 }
 0x1a5   : > { %v546_v13 = vsub.f32 1.0, %v545_v9 }
 0x1a7   : > { %v547_v8 = vmul.f32 %v2156_v23, %v546_v13 }
 0x1a9   : > { %v548_v11 = vadd.f32 %v2156_v23, %v547_v8  ;;  %v3289_v8 = vld [vmem:[#allocation37_spill] sm:$0xff] }
 0x1ab   : > { %v552_v12 = vsel %vm551_vm9, %v2156_v23, %v548_v11  ;;  %v3285_v23 = vld [vmem:[#allocation50_spill] sm:$0xff]  ;;  %v3287_v11 = vld [vmem:[#allocation35_spill] sm:$0xff] }
 0x1ac   : > { %v557_v24 = vsel %vm554_vm10, %v556_v19, %v552_v12  ;;  %v3291_v19 = vld [vmem:[#allocation31_spill] sm:$0xff]  ;;  %v3292_v12 = vld [vmem:[#allocation32_spill] sm:$0xff]  ;;  %vm1320_vm10 = vcmask (%p437_p0), 1042434  }
 0x1ad   : > { %v564_v25 = vrot.slane %v557_v24, 2  ;;  %v567_v17 = vmul.f32 %v2158_v16, %v557_v24  ;;  %v570_v9 = vrot.slane %v557_v24, 4  ;;  %v3293_v24 = vld [vmem:[#allocation33_spill] sm:$0xff]  ;;  %v3295_v16 = vld [vmem:[#allocation27_spill] sm:$0xff] }
 0x1af   : > { %v566_v15 = vmul.f32 %v3284_v20, %v564_v25  ;;  %v3294_v25 = vld [vmem:[#allocation34_spill] sm:$0xff]  ;;  %v3296_v20 = vld [vmem:[#allocation28_spill] sm:$0xff] }
 0x1b1   : > { %v2933_v27 = vadd.f32 %v567_v17, %v566_v15  ;;  %v3297_v15 = vld [vmem:[#allocation29_spill] sm:$0xff]  ;;  %v3298_v17 = vld [vmem:[#allocation30_spill] sm:$0xff] }
 0x1b3   : > { %2159 = vtanh.f32 %v2933_v27 }
 0x1b9   : > { %v2160_v13 = vpop.eup %2159 }
 0x1ba   : > { %v572_v14 = vmul.f32 %v2160_v13, %v570_v9  ;;  %v3299_v9 = vld [vmem:[#allocation23_spill] sm:$0xff]  ;;  %v3300_v13 = vld [vmem:[#allocation24_spill] sm:$0xff] }
 0x1bc   : > { %575 = vst [vmem:[%s2937_s16] sm:$0x3] %v572_v14  ;;  %597 = vmatmul.f32.vlgmr.msrb.gmra.mxu0 %v572_v14  ;;  %617 = vmatmul.f32.vlgmr.msrb.gmra.mxu1 %v572_v14 }
 0x1bd   : > { %637 = vmatmul.f32.vlgmr.msrb.gmra.mxu2 %v572_v14  ;;  %657 = vmatmul.f32.vlgmr.msrb.gmra.mxu3 %v572_v14  ;;  %v3301_v14 = vld [vmem:[#allocation25_spill] sm:$0xff] }
 0x1be   : > { %847 = vmatpush.msrb.mxu0 %v2682_v60  ;;  %867 = vmatpush.msrb.mxu1 %v2684_v61 }
 0x1bf   : > { %887 = vmatpush.msrb.mxu2 %v2686_v62  ;;  %907 = vmatpush.msrb.mxu3 %v2688_v63 }
 0x1c0   : > { %848 = vmatpush.msrb.mxu0 %v2674_v56  ;;  %868 = vmatpush.msrb.mxu1 %v2676_v57 }
 0x1c1   : > { %888 = vmatpush.msrb.mxu2 %v2678_v58  ;;  %908 = vmatpush.msrb.mxu3 %v2680_v59 }
 0x1c2   : > { %849 = vmatpush.msrb.mxu0 %v2666_v52  ;;  %869 = vmatpush.msrb.mxu1 %v2668_v53  ;;  %v2464_v53 = vmov (%p437_p0), 1987475062  }
 0x1c3   : > { %889 = vmatpush.msrb.mxu2 %v2670_v54  ;;  %909 = vmatpush.msrb.mxu3 %v2672_v55  ;;  %v1120_v54 = vunpack.c.l.s4 (%p437_p0), %v2464_v53 }
 0x1c4   : > { %850 = vmatpush.msrb.mxu0 %v2658_v48  ;;  %870 = vmatpush.msrb.mxu1 %v2660_v49  ;;  %v2462_v49 = vmov (%p437_p0), 842150450  }
 0x1c5   : > { %890 = vmatpush.msrb.mxu2 %v2662_v50  ;;  %910 = vmatpush.msrb.mxu3 %v2664_v51  ;;  %v1112_v50 = vunpack.c.l.s4 (%p437_p0), %v2462_v49  ;;  %v2463_v51 = vmov (%p437_p0), 1414812756   ;;  %v1121_v59 = vunpack.c.0.s8 (%p437_p0), %v1120_v54 }
 0x1c6   : > { %851 = vmatpush.msrb.mxu0 %v2650_v44  ;;  %871 = vmatpush.msrb.mxu1 %v2652_v45  ;;  %v1116_v52 = vunpack.c.l.s4 (%p437_p0), %v2463_v51 }
 0x1c7   : > { %891 = vmatpush.msrb.mxu2 %v2654_v46  ;;  %911 = vmatpush.msrb.mxu3 %v2656_v47  ;;  %v2461_v47 = vmov (%p437_p0), 269488144   ;;  %v1113_v57 = vunpack.c.0.s8 (%p437_p0), %v1112_v50 }
 0x1c8   : > { %852 = vmatpush.msrb.mxu0 %v2642_v40  ;;  %872 = vmatpush.msrb.mxu1 %v2644_v41  ;;  %v2189_v40 = vld [vmem:[%s3161_s6] ss:$0 sm:$0xff] (%p437_p0)  ;;  %v1108_v48 = vunpack.c.l.s4 (%p437_p0), %v2461_v47  ;;  %v1117_v58 = vunpack.c.0.s8 (%p437_p0), %v1116_v52 }
 0x1c9   : > { %892 = vmatpush.msrb.mxu2 %v2646_v42  ;;  %912 = vmatpush.msrb.mxu3 %v2648_v43 }
 0x1ca   : > { %853 = vmatpush.msrb.mxu0 %v2634_v36  ;;  %873 = vmatpush.msrb.mxu1 %v2636_v37  ;;  %v2188_v37 = vld [vmem:[%s3160_s5] ss:$0 sm:$0xff] (%p437_p0)  ;;  %v1109_v56 = vunpack.c.0.s8 (%p437_p0), %v1108_v48 }
 0x1cb   : > { %893 = vmatpush.msrb.mxu2 %v2638_v38  ;;  %913 = vmatpush.msrb.mxu3 %v2640_v39 }
 0x1cc   : > { %854 = vmatpush.msrb.mxu0 %v2626_v32  ;;  %874 = vmatpush.msrb.mxu1 %v2628_v33  ;;  %v2085_v32 = vld [vmem:[#allocation13 + $0x8] sm:$0xff] (%p437_p0)  ;;  %v2084_v33 = vld [vmem:[#allocation13] sm:$0xff] (%p437_p0) }
 0x1cd   : > { %894 = vmatpush.msrb.mxu2 %v2630_v34  ;;  %914 = vmatpush.msrb.mxu3 %v2632_v35 }
 0x1ce   : > { %855 = vmatpush.msrb.mxu0 %v3285_v23  ;;  %875 = vmatpush.msrb.mxu1 %v3286_v22  ;;  %v3302_v23 = vld [vmem:[#allocation26_spill] sm:$0xff] }
 0x1cf   : > { %895 = vmatpush.msrb.mxu2 %v2622_v30  ;;  %915 = vmatpush.msrb.mxu3 %v2624_v31  ;;  %v2087_v30 = vld [vmem:[#allocation13 + $0x18] sm:$0xff] (%p437_p0)  ;;  %v2086_v31 = vld [vmem:[#allocation13 + $0x10] sm:$0xff] (%p437_p0) }
 0x1d0   : > { %856 = vmatpush.msrb.mxu0 %v3250_v0  ;;  %876 = vmatpush.msrb.mxu1 %v3249_v21 }
 0x1d1   : > { %896 = vmatpush.msrb.mxu2 %v2614_v26  ;;  %916 = vmatpush.msrb.mxu3 %v3248_v2 }
 0x1d2   : > { %857 = vmatpush.msrb.mxu0 %v3254_v5  ;;  %877 = vmatpush.msrb.mxu1 %v3253_v3 }
 0x1d3   : > { %897 = vmatpush.msrb.mxu2 %v3251_v4  ;;  %917 = vmatpush.msrb.mxu3 %v3281_v28 }
 0x1d4   : > { %858 = vmatpush.msrb.mxu0 %v3283_v29  ;;  %878 = vmatpush.msrb.mxu1 %v3257_v7  ;;  %v2088_v29 = vld [vmem:[#allocation13 + $0x20] sm:$0xff] (%p437_p0) }
 0x1d5   : > { %898 = vmatpush.msrb.mxu2 %v3255_v10  ;;  %918 = vmatpush.msrb.mxu3 %v3256_v6 }
 0x1d6   : > { %859 = vmatpush.msrb.mxu0 %v3287_v11  ;;  %879 = vmatpush.msrb.mxu1 %v3288_v18 }
 0x1d7   : > { %899 = vmatpush.msrb.mxu2 %v3289_v8  ;;  %919 = vmatpush.msrb.mxu3 %v3290_v1 }
 0x1d8   : > { %860 = vmatpush.msrb.mxu0 %v3291_v19  ;;  %880 = vmatpush.msrb.mxu1 %v3292_v12 }
 0x1d9   : > { %900 = vmatpush.msrb.mxu2 %v3293_v24  ;;  %920 = vmatpush.msrb.mxu3 %v3294_v25  ;;  %v1945_v24 = vld [vmem:[%s2927_s15 + $0x8] sm:$0xff] }
 0x1da   : > { %861 = vmatpush.msrb.mxu0 %v3295_v16  ;;  %881 = vmatpush.msrb.mxu1 %v3296_v20 }
 0x1db   : > { %901 = vmatpush.msrb.mxu2 %v3297_v15  ;;  %921 = vmatpush.msrb.mxu3 %v3298_v17 }
 0x1dc   : > { %862 = vmatpush.msrb.mxu0 %v3299_v9  ;;  %882 = vmatpush.msrb.mxu1 %v3300_v13 }
 0x1dd   : > { %902 = vmatpush.msrb.mxu2 %v3301_v14  ;;  %922 = vmatpush.msrb.mxu3 %v3302_v23 }
 0x239   : > { %v618_v22 = vpop.f32.mrf.mxu1  ;;  %v598_v12 = vpop.f32.mrf.mxu0 }
 0x23a   : > { %v665_v11 = vrot.slane %v618_v22, 6 }
 0x23c   : > { %v668_v25 = vsel %vm319_vm1, %v598_v12, %v665_v11 }
 0x240   : > { %v638_v18 = vpop.f32.mrf.mxu2  ;;  %v658_v8 = vpop.f32.mrf.mxu3 }
 0x241   : > { %v666_v1 = vrot.slane %v638_v18, 4  ;;  %v667_v19 = vrot.slane %v658_v8, 2 }
 0x243   : > { %v669_v16 = vsel %vm321_vm3, %v666_v1, %v667_v19 }
 0x244   : > { %v670_v20 = vsel %vm323_vm5, %v668_v25, %v669_v16 }
 0x245   : > { %v672_v15 = vadd.f32 %v1945_v24, %v670_v20 }
 0x247   : > { %v1946_v17 = vmul.f32 -1.442695, %v672_v15  ;;  %v693_v22 = vrot.slane %v672_v15, 6 }
 0x249   : > { %2161 = vpow2.f32 %v1946_v17 }
 0x24f   : > { %v2162_v9 = vpop.eup %2161 }
 0x250   : > { %v676_v13 = vadd.f32 1.0, %v2162_v9 }
 0x252   : > { %2163 = vrcp.f32 %v676_v13  ;;  %v688_v18 = vand.u32 2147483648, %v676_v13  ;;  %v686_v2 = vand.u32 2147483647, %v676_v13  ;;  %vm682_vm12 = vweird.f32 %v676_v13 }
 0x253   : > { %2165 = vtanh.f32 %v693_v22 }
 0x254   : > { %v689_v1 = vor.u32 1.1754944e-38, %v688_v18  ;;  %vm687_vm14 = vcmp.eq.f32.partialorder %v686_v2, 8.507059e+37 }
 0x258   : > { %v2164_v14 = vpop.eup %2163 }
 0x259   : > { %v678_v23 = vmul.f32 %v2164_v14, %v676_v13  ;;  %vm683_vm11 = vweird.f32 %v2164_v14  ;;  %v2166_v25 = vpop.eup %2165 }
 0x25a   : > { %vm684_vm13 = vmor %vm682_vm12, %vm683_vm11  ;;  %vm1322_vm11 = vcmask (%p437_p0), 1043459   ;;  %vm1324_vm12 = vcmask (%p437_p0), 1044484  }
 0x25b   : > { %v679_v0 = vsub.f32 1.0, %v678_v23 }
 0x25d   : > { %v680_v8 = vmul.f32 %v2164_v14, %v679_v0 }
 0x25f   : > { %v681_v11 = vadd.f32 %v2164_v14, %v680_v8 }
 0x261   : > { %v685_v19 = vsel %vm684_vm13, %v2164_v14, %v681_v11  ;;  %vm1326_vm13 = vcmask (%p437_p0), 1045509  }
 0x262   : > { %v690_v12 = vsel %vm687_vm14, %v689_v1, %v685_v19  ;;  %vm1328_vm14 = vcmask (%p437_p0), 1046534  }
 0x263   : > { %v697_v24 = vrot.slane %v690_v12, 2  ;;  %v700_v20 = vmul.f32 %v2166_v25, %v690_v12  ;;  %v703_v0 = vrot.slane %v690_v12, 4 }
 0x265   : > { %v699_v16 = vmul.f32 %v697_v24, %v2933_v27  ;;  %v1952_v27 = vld [vmem:[%s2927_s15 + $0x10] sm:$0xff] }
 0x267   : > { %v701_v15 = vadd.f32 %v700_v20, %v699_v16 }
 0x269   : > { %2167 = vtanh.f32 %v701_v15 }
 0x26f   : > { %v2168_v17 = vpop.eup %2167 }
 0x270   : > { %v705_v9 = vmul.f32 %v2168_v17, %v703_v0 }
 0x272   : > { %1949 = vst [vmem:[%s2937_s16 + $0x2] sm:$0x3] %v705_v9  ;;  %730 = vmatmul.f32.vlgmr.msra.gmra.mxu0 %v705_v9  ;;  %750 = vmatmul.f32.vlgmr.msra.gmra.mxu1 %v705_v9 }
 0x273   : > { %770 = vmatmul.f32.vlgmr.msra.gmra.mxu2 %v705_v9  ;;  %790 = vmatmul.f32.vlgmr.msra.gmra.mxu3 %v705_v9 }
 0x2ef   : > { %v751_v13 = vpop.f32.mrf.mxu1  ;;  %v731_v8 = vpop.f32.mrf.mxu0 }
 0x2f0   : > { %v798_v14 = vrot.slane %v751_v13, 6 }
 0x2f2   : > { %v801_v11 = vsel %vm319_vm1, %v731_v8, %v798_v14 }
 0x2f6   : > { %v771_v2 = vpop.f32.mrf.mxu2  ;;  %v791_v23 = vpop.f32.mrf.mxu3 }
 0x2f7   : > { %v799_v22 = vrot.slane %v771_v2, 4  ;;  %v800_v18 = vrot.slane %v791_v23, 2 }
 0x2f9   : > { %v802_v1 = vsel %vm321_vm3, %v799_v22, %v800_v18 }
 0x2fa   : > { %v803_v19 = vsel %vm323_vm5, %v801_v11, %v802_v1 }
 0x2fb   : > { %v805_v12 = vadd.f32 %v1952_v27, %v803_v19 }
 0x2fd   : > { %v1953_v24 = vmul.f32 -1.442695, %v805_v12  ;;  %v826_v17 = vrot.slane %v805_v12, 6 }
 0x2ff   : > { %2169 = vpow2.f32 %v1953_v24 }
 0x305   : > { %v2170_v25 = vpop.eup %2169 }
 0x306   : > { %v809_v16 = vadd.f32 1.0, %v2170_v25 }
 0x308   : > { %2171 = vrcp.f32 %v809_v16  ;;  %v821_v13 = vand.u32 2147483648, %v809_v16  ;;  %v819_v23 = vand.u32 2147483647, %v809_v16  ;;  %vm815_vm0 = vweird.f32 %v809_v16 }
 0x309   : > { %2173 = vtanh.f32 %v826_v17 }
 0x30a   : > { %v822_v22 = vor.u32 1.1754944e-38, %v821_v13  ;;  %vm820_vm4 = vcmp.eq.f32.partialorder %v819_v23, 8.507059e+37 }
 0x30e   : > { %v2172_v20 = vpop.eup %2171 }
 0x30f   : > { %v811_v0 = vmul.f32 %v2172_v20, %v809_v16  ;;  %vm816_vm15 = vweird.f32 %v2172_v20  ;;  %v2174_v11 = vpop.eup %2173 }
 0x310   : > { %vm817_vm2 = vmor %vm815_vm0, %vm816_vm15  ;;  %vm1330_vm15 = vcmask (%p437_p0), 1047559   ;;  %vm1248_vm0 = vcmask (%p437_p0), 64512  }
 0x311   : > { %v812_v9 = vsub.f32 1.0, %v811_v0 }
 0x313   : > { %v813_v2 = vmul.f32 %v2172_v20, %v812_v9 }
 0x315   : > { %v814_v14 = vadd.f32 %v2172_v20, %v813_v2 }
 0x317   : > { %v818_v18 = vsel %vm817_vm2, %v2172_v20, %v814_v14 }
 0x318   : > { %v823_v8 = vsel %vm820_vm4, %v822_v22, %v818_v18 }
 0x319   : > { %v830_v27 = vrot.slane %v823_v8, 2  ;;  %v833_v19 = vmul.f32 %v2174_v11, %v823_v8  ;;  %v836_v12 = vrot.slane %v823_v8, 4 }
 0x31b   : > { %v832_v1 = vmul.f32 %v830_v27, %v701_v15  ;;  %v1959_v15 = vld [vmem:[%s2927_s15 + $0x18] sm:$0xff] }
 0x31d   : > { %v834_v24 = vadd.f32 %v833_v19, %v832_v1 }
 0x31f   : > { %2175 = vtanh.f32 %v834_v24 }
 0x325   : > { %v2176_v25 = vpop.eup %2175 }
 0x326   : > { %v838_v0 = vmul.f32 %v2176_v25, %v836_v12 }
 0x328   : > { %1956 = vst [vmem:[%s2937_s16 + $0x4] sm:$0x3] %v838_v0  ;;  %863 = vmatmul.f32.vlgmr.msrb.gmra.mxu0 %v838_v0  ;;  %883 = vmatmul.f32.vlgmr.msrb.gmra.mxu1 %v838_v0 }
 0x329   : > { %903 = vmatmul.f32.vlgmr.msrb.gmra.mxu2 %v838_v0  ;;  %923 = vmatmul.f32.vlgmr.msrb.gmra.mxu3 %v838_v0 }
 0x3a5   : > { %v884_v16 = vpop.f32.mrf.mxu1  ;;  %v864_v23 = vpop.f32.mrf.mxu0 }
 0x3a6   : > { %v931_v17 = vrot.slane %v884_v16, 6 }
 0x3a8   : > { %v934_v14 = vsel %vm319_vm1, %v864_v23, %v931_v17  ;;  %vm1188_vm1 = vcmask (%p437_p0), 1047556  }
 0x3ac   : > { %v904_v20 = vpop.f32.mrf.mxu2  ;;  %v924_v9 = vpop.f32.mrf.mxu3 }
 0x3ad   : > { %v932_v13 = vrot.slane %v904_v20, 4  ;;  %v933_v2 = vrot.slane %v924_v9, 2 }
 0x3af   : > { %v935_v22 = vsel %vm321_vm3, %v932_v13, %v933_v2  ;;  %vm1318_vm3 = vcmask (%p437_p0), 1041409  }
 0x3b0   : > { %v936_v18 = vsel %vm323_vm5, %v934_v14, %v935_v22 }
 0x3b1   : > { %v938_v8 = vadd.f32 %v1959_v15, %v936_v18 }
 0x3b3   : > { %v1960_v27 = vmul.f32 -1.442695, %v938_v8  ;;  %v959_v25 = vrot.slane %v938_v8, 6 }
 0x3b5   : > { %2177 = vpow2.f32 %v1960_v27 }
 0x3bb   : > { %v2178_v11 = vpop.eup %2177 }
 0x3bc   : > { %v942_v1 = vadd.f32 1.0, %v2178_v11  ;;  %v2091_v11 = vld [vmem:[#allocation13 + $0x38] sm:$0xff] (%p437_p0) }
 0x3bd   :  { %1079 = vmatpush.bf16.msra.mxu0 (%p437_p0), %v2091_v11 }
 0x3be   : > { %2179 = vrcp.f32 %v942_v1  ;;  %v954_v16 = vand.u32 2147483648, %v942_v1  ;;  %v952_v9 = vand.u32 2147483647, %v942_v1  ;;  %vm948_vm7 = vweird.f32 %v942_v1 }
 0x3bf   : > { %2181 = vtanh.f32 %v959_v25  ;;  %v2089_v25 = vld [vmem:[#allocation13 + $0x28] sm:$0xff] (%p437_p0) }
 0x3c0   : > { %v955_v13 = vor.u32 1.1754944e-38, %v954_v16  ;;  %vm953_vm9 = vcmp.eq.f32.partialorder %v952_v9, 8.507059e+37 }
 0x3c4   : > { %v2180_v19 = vpop.eup %2179 }
 0x3c5   : > { %v944_v12 = vmul.f32 %v2180_v19, %v942_v1  ;;  %vm949_vm6 = vweird.f32 %v2180_v19  ;;  %v2182_v14 = vpop.eup %2181 }
 0x3c6   : > { %vm950_vm8 = vmor %vm948_vm7, %vm949_vm6 }
 0x3c7   : > { %v945_v0 = vsub.f32 1.0, %v944_v12 }
 0x3c9   : > { %v946_v20 = vmul.f32 %v2180_v19, %v945_v0 }
 0x3cb   : > { %v947_v17 = vadd.f32 %v2180_v19, %v946_v20 }
 0x3cd   : > { %v951_v2 = vsel %vm950_vm8, %v2180_v19, %v947_v17 }
 0x3ce   : > { %v956_v23 = vsel %vm953_vm9, %v955_v13, %v951_v2 }
 0x3cf   : > { %v963_v15 = vrot.slane %v956_v23, 2  ;;  %v966_v18 = vmul.f32 %v2182_v14, %v956_v23  ;;  %v969_v8 = vrot.slane %v956_v23, 4 }
 0x3d1   : > { %v965_v22 = vmul.f32 %v963_v15, %v834_v24  ;;  %v2090_v24 = vld [vmem:[#allocation13 + $0x30] sm:$0xff] (%p437_p0) }
 0x3d2   :  { %1080 = vmatpush.bf16.msra.mxu0 (%p437_p0), %v2090_v24 }
 0x3d3   : > { %v967_v18 = vadd.f32 %v966_v18, %v965_v22  }
 0x3d5   : > { %2183 = vtanh.f32 %v967_v18 }
 0x3d6   :  { %1081 = vmatpush.bf16.msra.mxu0 (%p437_p0), %v2089_v25 }
 0x3da   :  { %439 = sbr.rel (!%p437_p0) target bundleno = 232 (0xe8), region = 146  ;;  %1082 = vmatpush.bf16.msra.mxu0 (%p437_p0), %v2088_v29 }
 0x3db   : > { %v2184_v27 = vpop.eup %2183 }
 0x3dc   : > { %v971_v1 = vmul.f32 %v2184_v27, %v969_v8  }
 0x3de   : > { %1963 = vst [vmem:[%s2937_s16 + $0x6] sm:$0x3] %v971_v1  ;;  %1083 = vmatpush.bf16.msra.mxu0 (%p437_p0), %v2087_v30 }
 0x3e2   :  { %1084 = vmatpush.bf16.msra.mxu0 %v2086_v31 }
 0x3e5   :  { %v3027_v19 = vld [vmem:[#allocation3] sm:$0x3]  ;;  %v3029_v12 = vld [vmem:[#allocation3 + $0x2] sm:$0x3]  ;;  %v3031_v0 = vld [vmem:[#allocation3 + $0x4] sm:$0x3] }
 0x3e6   :  { %v3033_v16 = vld [vmem:[#allocation3 + $0x6] sm:$0x3]  ;;  %991 = vst [vmem:[#allocation1] ss:$4 sm:$0xff] %v3027_v19  ;;  %v3036_v20 = vld [vmem:[#allocation3 + $0x8] sm:$0x3]  ;;  %1085 = vmatpush.bf16.msra.mxu0 %v2085_v32 }
 0x3e7   :  { %993 = vst [vmem:[#allocation1 + $0x1] ss:$4 sm:$0xff] %v3029_v12  ;;  %v3039_v1 = vld [vmem:[#allocation3 + $0xa] sm:$0x3]  ;;  %v3042_v26 = vld [vmem:[#allocation3 + $0xc] sm:$0x3] }
 0x3e8   :  { %995 = vst [vmem:[#allocation1 + $0x2] ss:$4 sm:$0xff] %v3031_v0  ;;  %v3045_v28 = vld [vmem:[#allocation3 + $0xe] sm:$0x3] }
 0x3e9   :  { %997 = vst [vmem:[#allocation1 + $0x3] ss:$4 sm:$0xff] %v3033_v16 }
 0x3ea   :  { %999 = vst [vmem:[#allocation1 + $0x20] ss:$4 sm:$0xff] %v3036_v20  ;;  %1086 = vmatpush.bf16.msra.mxu0 %v2084_v33 }
 0x3eb   :  { %1001 = vst [vmem:[#allocation1 + $0x21] ss:$4 sm:$0xff] %v3039_v1 }
 0x3ec   :  { %1003 = vst [vmem:[#allocation1 + $0x22] ss:$4 sm:$0xff] %v3042_v26 }
 0x3ed   :  { %1005 = vst [vmem:[#allocation1 + $0x23] ss:$4 sm:$0xff] %v3045_v28 }
 0x3f0   :  { %v1006_v34 = vld.sshfl [vmem:[#allocation1] sm:$0xff pattern:$0x73625140] }
 0x3f4   :  { %v1007_v35 = vld.sshfl [vmem:[#allocation1 + $0x20] sm:$0xff pattern:$0x73625140] }
 0x3f5   :  { %v1010_v36 = vpack.c.bf16 %v1007_v35, %v1006_v34 }
 0x3f7   :  { %1087 = vmatmul.bf16.vlgmr.msra.gmra.mxu0 %v1010_v36  ;;  %v2465_v36 = vmov 1934713408  }
 0x474   :  { %v1088_v38 = vpop.f32.mrf.mxu0 }
 0x475   :  { %v1089_v39 = vadd.f32 %v2188_v37, %v1088_v38  ;;  %v1308_v38 = vlaneseq }
 0x477   :  { %2191 = vtanh.f32 %v1089_v39 }
 0x47c   :  { %v1090_v41 = vpop.f32.mrf.mxu0 }
 0x47d   :  { %v2192_v42 = vpop.eup %2191  ;;  %v1091_v43 = vadd.f32 %v2188_v37, %v1090_v41  ;;  %v1191_v37 = vunpack.c.l.s4 %v2465_v36 }
 0x47e   :  { %v1099_v44 = vmul.f32 %v2192_v42, %v2189_v40 }
 0x47f   :  { %2193 = vtanh.f32 %v1091_v43 }
 0x480   :  { %1101 = vadd.xlane.f32.xlu0 %v1099_v44  ;;  %v3058_v44 = vunpack.c.0.s8 %v1191_v37 }
 0x485   :  { %v2194_v45 = vpop.eup %2193 }
 0x486   :  { %v1100_v46 = vmul.f32 %v2194_v45, %v2189_v40  ;;  %v3061_v45 = vand.u32 127, %v1308_v38 }
 0x488   :  { %1103 = vadd.xlane.f32.xlu0 %v1100_v46 }
 0x4f3   :  { %v1102_v55 = vpop.xlane.xlu0 %1101 }
 0x4f4   :  { %v1110_v60 = vperm.slane %v1102_v55, %v1109_v56  ;;  %v1114_v61 = vperm.slane %v1102_v55, %v1113_v57  ;;  %v1118_v62 = vperm.slane %v1102_v55, %v1117_v58  ;;  %v1122_v63 = vperm.slane %v1102_v55, %v1121_v59 }
 0x4fb   :  { %v1104_v21 = vpop.xlane.xlu0 %1103 }
 0x4fc   :  { %v1126_v4 = vperm.slane %v1104_v21, %v1109_v56  ;;  %v1130_v3 = vperm.slane %v1104_v21, %v1113_v57  ;;  %v1134_v5 = vperm.slane %v1104_v21, %v1117_v58  ;;  %v1138_v10 = vperm.slane %v1104_v21, %v1121_v59 }
 0x4fe   :  { %v1147_v6 = vmax.f32 %v1110_v60, %v1126_v4  ;;  %v1148_v7 = vmax.f32 %v1114_v61, %v1130_v3  ;;  %v1149_v9 = vmax.f32 %v1118_v62, %v1134_v5  ;;  %v1150_v17 = vmax.f32 %v1122_v63, %v1138_v10 }
 0x500   :  { %v1151_v13 = vmax.f32 %v1147_v6, %v1148_v7  ;;  %v1152_v2 = vmax.f32 %v1149_v9, %v1150_v17 }
 0x502   :  { %v1153_v23 = vmax.f32 %v1151_v13, %v1152_v2 }
 0x504   :  { %v1158_v15 = vsub.f32 %v1126_v4, %v1153_v23  ;;  %v1159_v14 = vsub.f32 %v1130_v3, %v1153_v23  ;;  %v1160_v22 = vsub.f32 %v1134_v5, %v1153_v23  ;;  %v1161_v18 = vsub.f32 %v1138_v10, %v1153_v23 }
 0x505   :  { %v1154_v8 = vsub.f32 %v1110_v60, %v1153_v23  ;;  %v1155_v27 = vsub.f32 %v1114_v61, %v1153_v23  ;;  %v1156_v29 = vsub.f32 %v1118_v62, %v1153_v23  ;;  %v1157_v31 = vsub.f32 %v1122_v63, %v1153_v23 }
 0x506   :  { %v1170_v11 = vmul.f32 1.442695, %v1158_v15  ;;  %v1172_v24 = vmul.f32 1.442695, %v1159_v14  ;;  %v1174_v25 = vmul.f32 1.442695, %v1160_v22 }
 0x507   :  { %v1176_v30 = vmul.f32 1.442695, %v1161_v18  ;;  %v1162_v32 = vmul.f32 1.442695, %v1154_v8  ;;  %v1164_v33 = vmul.f32 1.442695, %v1155_v27 }
 0x508   :  { %2195 = vpow2.f32 %v1170_v11  ;;  %v1166_v34 = vmul.f32 1.442695, %v1156_v29  ;;  %v1168_v35 = vmul.f32 1.442695, %v1157_v31 }
 0x509   :  { %2197 = vpow2.f32 %v1172_v24 }
 0x50a   :  { %2199 = vpow2.f32 %v1174_v25 }
 0x50b   :  { %2201 = vpow2.f32 %v1176_v30 }
 0x50c   :  { %2203 = vpow2.f32 %v1162_v32 }
 0x50d   :  { %2205 = vpow2.f32 %v1164_v33 }
 0x50e   :  { %v2196_v39 = vpop.eup %2195  ;;  %2207 = vpow2.f32 %v1166_v34 }
 0x50f   :  { %v2198_v40 = vpop.eup %2197  ;;  %2209 = vpow2.f32 %v1168_v35  ;;  %v1183_v47 = vmul.f32 %v2196_v39, %v3036_v20  ;;  %v1288_v50 = vpack.c.bf16 %v2196_v39, %v2196_v39 }
 0x510   :  { %v2200_v41 = vpop.eup %2199  ;;  %v1184_v42 = vmul.f32 %v2198_v40, %v3039_v1  ;;  %v1289_v1 = vpack.c.bf16 %v2198_v40, %v2198_v40 }
 0x511   :  { %v2202_v43 = vpop.eup %2201  ;;  %v1185_v52 = vmul.f32 %v2200_v41, %v3042_v26  ;;  %v1290_v54 = vpack.c.bf16 %v2200_v41, %v2200_v41  ;;  %v1304_v13 = vunpack.c.l.b16 %v1288_v50 }
 0x512   :  { %v2204_v46 = vpop.eup %2203  ;;  %v1186_v48 = vmul.f32 %v2202_v43, %v3045_v28  ;;  %v1204_v49 = vrot.slane %v1184_v42, 4  ;;  %v1291_v5 = vpack.c.bf16 %v2202_v43, %v2202_v43  ;;  %v1305_v23 = vunpack.c.l.b16 %v1289_v1 }
 0x513   :  { %v2206_v51 = vpop.eup %2205  ;;  %v1284_v53 = vpack.c.bf16 %v2204_v46, %v2204_v46  ;;  %v1179_v28 = vmul.f32 %v2204_v46, %v3027_v19  ;;  %v1306_v22 = vunpack.c.l.b16 %v1290_v54  ;;  %v1314_v11 = vperm.slane %v1304_v13, %v3061_v45 }
 0x514   :  { %v2208_v55 = vpop.eup %2207  ;;  %v1205_v56 = vsel %vm1188_vm1, %v1204_v49, %v1183_v47  ;;  %v1212_v57 = vrot.slane %v1186_v48, 4  ;;  %v1180_v58 = vmul.f32 %v2206_v51, %v3029_v12  ;;  %v1285_v59 = vpack.c.bf16 %v2206_v51, %v2206_v51 }
 0x515   :  { %v2210_v60 = vpop.eup %2209  ;;  %v1209_v20 = vperm.slane %v1205_v56, %v3058_v44  ;;  %v1286_v61 = vpack.c.bf16 %v2208_v55, %v2208_v55  ;;  %v1300_v62 = vunpack.c.l.b16 %v1284_v53  ;;  %v1181_v6 = vmul.f32 %v2208_v55, %v3031_v0 }
 0x516   :  { %v1213_v63 = vsel %vm1188_vm1, %v1212_v57, %v1185_v52  ;;  %v1182_v26 = vmul.f32 %v2210_v60, %v3033_v16  ;;  %v1187_v21 = vrot.slane %v1180_v58, 4  ;;  %v1287_v4 = vpack.c.bf16 %v2210_v60, %v2210_v60 }
 0x517   :  { %v1217_v3 = vperm.slane %v1213_v63, %v3058_v44  ;;  %1228 = vst [vmem:[#allocation1 + $0x2] ss:$4 sm:$0xff] %v1209_v20  ;;  %v1301_v10 = vunpack.c.l.b16 %v1285_v59  ;;  %v1302_v12 = vunpack.c.l.b16 %v1286_v61  ;;  %v1310_v16 = vperm.slane %v1300_v62, %v3061_v45 }
 0x518   :  { %v1189_v7 = vsel %vm1188_vm1, %v1187_v21, %v1179_v28  ;;  %v1196_v9 = vrot.slane %v1182_v26, 4  ;;  %v1303_v19 = vunpack.c.l.b16 %v1287_v4  ;;  %v1307_v18 = vunpack.c.l.b16 %v1291_v5 }
 0x519   :  { %1230 = vst [vmem:[#allocation1 + $0x3] ss:$4 sm:$0xff] %v1217_v3  ;;  %v1193_v17 = vperm.slane %v1189_v7, %v3058_v44  ;;  %v1311_v15 = vperm.slane %v1301_v10, %v3061_v45  ;;  %v1312_v14 = vperm.slane %v1302_v12, %v3061_v45  ;;  %v1315_v25 = vperm.slane %v1305_v23, %v3061_v45 }
 0x51a   :  { %v1197_v2 = vsel %vm1188_vm1, %v1196_v9, %v1181_v6  ;;  %v1313_v8 = vperm.slane %v1303_v19, %v3061_v45  ;;  %v1316_v30 = vperm.slane %v1306_v22, %v3061_v45  ;;  %v1317_v33 = vperm.slane %v1307_v18, %v3061_v45  ;;  %v3094_v45 = vld [vmem:[%s3162_s7] sm:$0xf] }
 0x51b   :  { %v1201_v0 = vperm.slane %v1197_v2, %v3058_v44  ;;  %1224 = vst [vmem:[#allocation1] ss:$4 sm:$0xff] %v1193_v17  ;;  %v1319_v27 = vsel %vm1318_vm3, %v1311_v15, %v1310_v16  ;;  %v1194_v32 = vrot.slane %v1193_v17, 4  ;;  %v1210_v37 = vrot.slane %v1209_v20, 4 }
 0x51c   :  { %v1321_v24 = vsel %vm1320_vm10, %v1312_v14, %v1319_v27  ;;  %v1218_v40 = vrot.slane %v1217_v3, 4  ;;  %v1404_v54 = vshrl.u32 %v1308_v38, 7  ;;  %v2466_v3 = vmov 1983009808  }
 0x51d   :  { %1226 = vst [vmem:[#allocation1 + $0x1] ss:$4 sm:$0xff] %v1201_v0  ;;  %v1323_v29 = vsel %vm1322_vm11, %v1313_v8, %v1321_v24  ;;  %v1202_v35 = vrot.slane %v1201_v0, 4  ;;  %v1195_v42 = vsel %vm1188_vm1, 0.0, %v1194_v32  ;;  %v1211_v49 = vsel %vm1188_vm1, 0.0, %v1210_v37 }
 0x51e   :  { %v1325_v31 = vsel %vm1324_vm12, %v1314_v11, %v1323_v29  ;;  %v1219_v50 = vsel %vm1188_vm1, 0.0, %v1218_v40  ;;  %2187 = vset.pattern.permute.xlu0 %v1404_v54  ;;  %2186 = vset.pattern.permute.xlu2 %v1404_v54  ;;  %v1353_v5 = vunpack.c.l.s4 %v2466_v3 }
 0x51f   :  { %v1327_v34 = vsel %vm1326_vm13, %v1315_v25, %v1325_v31  ;;  %v1203_v46 = vsel %vm1188_vm1, 0.0, %v1202_v35  ;;  %2185 = vset.pattern.permute.xlu1 %v1404_v54 }
 0x520   :  { %v1329_v36 = vsel %vm1328_vm14, %v1316_v30, %v1327_v34  ;;  %v3106_v10 = vunpack.c.0.s8 %v1353_v5 }
 0x521   :  { %v1331_v39 = vsel %vm1330_vm15, %v1317_v33, %v1329_v36 }
 0x522   :  { %v1332_v41 = vpack.c.b16 %v1331_v39, %v1331_v39 }
 0x524   :  { %v1231_v43 = vld.sshfl [vmem:[#allocation1] sm:$0xff pattern:$0x73625140]  ;;  %v1334_v47 = vsel %vm323_vm5, %v1332_v41, 0 }
 0x525   :  { %v1246_v48 = vpack.c.bf16 %v1231_v43, %v1231_v43  ;;  %1237 = vst [vmem:[#allocation1] ss:$4 sm:$0xff] %v1195_v42  ;;  %1343 = vmatpush.bf16.msra.mxu3 %v1334_v47 }
 0x526   :  { %1239 = vst [vmem:[#allocation1 + $0x1] ss:$4 sm:$0xff] %v1203_v46 }
 0x527   :  { %v1253_v51 = vsel %vm323_vm5, %v1246_v48, 0  ;;  %1241 = vst [vmem:[#allocation1 + $0x2] ss:$4 sm:$0xff] %v1211_v49 }
 0x528   :  { %1265 = vmatpush.bf16.msra.mxu2 %v1253_v51  ;;  %1243 = vst [vmem:[#allocation1 + $0x3] ss:$4 sm:$0xff] %v1219_v50  ;;  %1998 = vmatmul.msk.bf16.vlgmr.msra.gmra.mxu3 %vm1248_vm0, %v3094_v45  ;;  %v2107_v50 = vld [vmem:[#allocation16 + $0x38] sm:$0xff] }
 0x529   :  { %1699 = vmatpush.bf16.msrb.mxu3 %v2107_v50 }
 0x52b   :  { %1996 = vmatmul.msk.bf16.vlgmr.msra.gmra.mxu2 %vm1248_vm0, %v3094_v45 }
 0x52f   :  { %v1244_v52 = vld.sshfl [vmem:[#allocation1] sm:$0xff pattern:$0x73625140] }
 0x530   :  { %v1247_v53 = vpack.c.bf16 %v1244_v52, %v1244_v52 }
 0x532   :  { %v1256_v1 = vsel %vm323_vm5, %v1247_v53, 0 }
 0x533   :  { %1278 = vmatpush.bf16.msrb.mxu2 %v1256_v1  ;;  %v2106_v1 = vld [vmem:[#allocation16 + $0x30] sm:$0xff] }
 0x534   :  { %1700 = vmatpush.bf16.msrb.mxu3 %v2106_v1 }
 0x53b   :  { %1997 = vmatmul.msk.bf16.vlgmr.msrb.gmra.mxu2 %vm1248_vm0, %v3094_v45 }
 0x5ab   :  { %v1345_v55 = vpop.f32.mrf.mxu3 }
 0x5ac   :  { %2211 = vrcp.f32 %v1345_v55 }
 0x5ae   :  { %v1267_v56 = vpop.f32.mrf.mxu2 }
 0x5af   :  { %v1350_v12 = vrot.slane %v1267_v56, 4  ;;  %v1355_v6 = vperm.slane %v1267_v56, %v3106_v10 }
 0x5b1   :  { %v1351_v7 = vsel %vm1188_vm1, 0.0, %v1350_v12  ;;  %v1372_v19 = vrot.slane %v1355_v6, 4 }
 0x5b2   :  { %v2212_v57 = vpop.eup %2211  ;;  %v1359_v13 = vperm.slane %v1351_v7, %v3106_v10 }
 0x5b3   :  { %v1347_v58 = vpop.f32.mrf.mxu3  ;;  %v1423_v59 = vperm.slane %v2212_v57, 3  ;;  %v1416_v60 = vperm.slane %v2212_v57, 2  ;;  %v1402_v20 = vperm.slane %v2212_v57, 0  ;;  %v1451_v61 = vperm.slane %v2212_v57, 7 }
 0x5b4   :  { %v1409_v62 = vperm.slane %v2212_v57, 1  ;;  %v1444_v63 = vperm.slane %v2212_v57, 6  ;;  %v1437_v26 = vperm.slane %v2212_v57, 5  ;;  %v1430_v4 = vperm.slane %v2212_v57, 4 }
 0x5b5   :  { %1428 = vperm.xlu1 %2185, %v1423_v59   ;;  %1421 = vperm.xlu2 %2186, %v1416_v60   ;;  %v1384_v23 = vrot.slane %v1359_v13, 4  ;;  %v2105_v60 = vld [vmem:[#allocation16 + $0x28] sm:$0xff] }
 0x5b6   :  { %v1269_v28 = vpop.f32.mrf.mxu2  ;;  %1407 = vperm.xlu0 %2187, %v1402_v20   ;;  %1701 = vmatpush.bf16.msrb.mxu3 %v2105_v60 }
 0x5bd   :  { %1456 = vperm.xlu2 %2186, %v1451_v61   ;;  %1414 = vperm.xlu1 %2185, %v1409_v62  }
 0x5be   :  { %v1280_v38 = vpop.f32.mrf.mxu2 }
 0x5bf   :  { %v1360_v9 = vrot.slane %v1280_v38, 4  ;;  %v1365_v17 = vperm.slane %v1280_v38, %v3106_v10 }
 0x5c1   :  { %v1361_v16 = vsel %vm1188_vm1, 0.0, %v1360_v9  ;;  %v1373_v2 = vsel %vm1188_vm1, %v1365_v17, %v1372_v19  ;;  %v1370_v0 = vrot.slane %v1365_v17, 4 }
 0x5c2   :  { %v1369_v15 = vperm.slane %v1361_v16, %v3106_v10  ;;  %v1381_v27 = vperm.slane %v1373_v2, %v3058_v44 }
 0x5c3   :  { %v1371_v18 = vsel %vm1188_vm1, %v1370_v0, %v1355_v6 }
 0x5c4   :  { %v1385_v14 = vsel %vm1188_vm1, %v1369_v15, %v1384_v23  ;;  %v1382_v22 = vrot.slane %v1369_v15, 4  ;;  %v1396_v25 = vrot.slane %v1381_v27, 4  ;;  %v1377_v30 = vperm.slane %v1371_v18, %v3058_v44  ;;  %v2102_v18 = vld [vmem:[#allocation16 + $0x10] sm:$0xff] }
 0x5c5   :  { %1449 = vperm.xlu2 %2186, %v1444_v63   ;;  %1442 = vperm.xlu1 %2185, %v1437_v26   ;;  %v1393_v33 = vperm.slane %v1385_v14, %v3058_v44  ;;  %v2099_v14 = vld [vmem:[#allocation14 + $0x38] sm:$0xff] }
 0x5c6   :  { %v1282_v21 = vpop.f32.mrf.mxu2  ;;  %v1383_v8 = vsel %vm1188_vm1, %v1382_v22, %v1359_v13  ;;  %v1397_v34 = vsel %vm1188_vm1, 0.0, %v1396_v25  ;;  %v1394_v37 = vrot.slane %v1377_v30, 4  ;;  %v2103_v22 = vld [vmem:[#allocation16 + $0x18] sm:$0xff]  ;;  %v1549_v25 = vld [vmem:[#allocation3 + $0x4] sm:$0x3] }
 0x5c7   :  { %v1400_v40 = vrot.slane %v1393_v33, 4  ;;  %v1389_v46 = vperm.slane %v1383_v8, %v3058_v44  ;;  %v2097_v8 = vld [vmem:[#allocation14 + $0x28] sm:$0xff]  ;;  %1567 = vst [vmem:[#allocation1 + $0x2] ss:$4 sm:$0xff] %v1549_v25 }
 0x5c8   :  { %v1395_v43 = vsel %vm1188_vm1, 0.0, %v1394_v37  ;;  %v2093_v37 = vld [vmem:[#allocation14 + $0x8] sm:$0xff] }
 0x5c9   :  { %v1401_v49 = vsel %vm1188_vm1, 0.0, %v1400_v40  ;;  %v1398_v53 = vrot.slane %v1389_v46, 4 }
 0x5cb   :  { %v1399_v59 = vsel %vm1188_vm1, 0.0, %v1398_v53 }
 0x5cd   :  { %1435 = vperm.xlu1 %2185, %v1430_v4  }
 0x60f   :  { %v1422_v11 = vpop.permute.xlu2 %1421 }
 0x610   :  { %v1460_v24 = vmul.f32 %v1422_v11, %v1381_v27  ;;  %v1547_v27 = vld [vmem:[#allocation3] sm:$0x3]  ;;  %v1548_v11 = vld [vmem:[#allocation3 + $0x2] sm:$0x3] }
 0x611   :  { %1563 = vst [vmem:[#allocation1] ss:$4 sm:$0xff] %v1547_v27 }
 0x612   :  { %v1466_v32 = vrot.slane %v1460_v24, 4  ;;  %v2101_v24 = vld [vmem:[#allocation16 + $0x8] sm:$0xff]  ;;  %1565 = vst [vmem:[#allocation1 + $0x1] ss:$4 sm:$0xff] %v1548_v11 }
 0x617   :  { %v1457_v41 = vpop.permute.xlu2 %1456 }
 0x618   :  { %v1465_v54 = vmul.f32 %v1457_v41, %v1401_v49 }
 0x61a   :  { %v1484_v20 = vrot.slane %v1465_v54, 4 }
 0x61f   :  { %v1450_v61 = vpop.permute.xlu2 %1449 }
 0x620   :  { %v1464_v38 = vmul.f32 %v1450_v61, %v1393_v33  ;;  %v2095_v33 = vld [vmem:[#allocation14 + $0x18] sm:$0xff] }
 0x622   :  { %v1478_v21 = vrot.slane %v1464_v38, 4 }
 0x627   :  { %v1429_v29 = vpop.permute.xlu1 %1428 }
 0x628   :  { %v1408_v31 = vpop.permute.xlu0 %1407  ;;  %v1461_v39 = vmul.f32 %v1429_v29, %v1397_v34  ;;  %v1550_v29 = vld [vmem:[#allocation3 + $0x6] sm:$0x3]  ;;  %v1553_v34 = vld [vmem:[#allocation3 + $0xc] sm:$0x3] }
 0x629   :  { %v1458_v35 = vmul.f32 %v1408_v31, %v1377_v30  ;;  %v2096_v30 = vld [vmem:[#allocation14 + $0x20] sm:$0xff]  ;;  %v1551_v31 = vld [vmem:[#allocation3 + $0x8] sm:$0x3]  ;;  %1569 = vst [vmem:[#allocation1 + $0x3] ss:$4 sm:$0xff] %v1550_v29 }
 0x62a   :  { %v1472_v47 = vrot.slane %v1461_v39, 4  ;;  %1571 = vst [vmem:[#allocation1 + $0x20] ss:$4 sm:$0xff] %v1551_v31 }
 0x62b   :  { %v1467_v36 = vsel %vm1188_vm1, %v1466_v32, %v1458_v35  ;;  %v1552_v32 = vld [vmem:[#allocation3 + $0xa] sm:$0x3]  ;;  %v1554_v35 = vld [vmem:[#allocation3 + $0xe] sm:$0x3]  ;;  %1575 = vst [vmem:[#allocation1 + $0x22] ss:$4 sm:$0xff] %v1553_v34 }
 0x62c   :  { %v1471_v55 = vperm.slane %v1467_v36, %v3106_v10  ;;  %1573 = vst [vmem:[#allocation1 + $0x21] ss:$4 sm:$0xff] %v1552_v32  ;;  %v2094_v36 = vld [vmem:[#allocation14 + $0x10] sm:$0xff] }
 0x62d   :  { %1577 = vst [vmem:[#allocation1 + $0x23] ss:$4 sm:$0xff] %v1554_v35 }
 0x62f   :  { %v1415_v42 = vpop.permute.xlu1 %1414 }
 0x630   :  { %v1459_v48 = vmul.f32 %v1415_v42, %v1395_v43  ;;  %v1578_v39 = vld.sshfl [vmem:[#allocation1] sm:$0xff pattern:$0x73625140] }
 0x631   :  { %v2092_v42 = vld [vmem:[#allocation14] sm:$0xff] }
 0x632   :  { %v1473_v51 = vsel %vm1188_vm1, %v1472_v47, %v1459_v48 }
 0x633   :  { %v1477_v52 = vperm.slane %v1473_v51, %v3106_v10 }
 0x634   :  { %v1579_v40 = vld.sshfl [vmem:[#allocation1 + $0x20] sm:$0xff pattern:$0x73625140] }
 0x635   :  { %v1490_v56 = vrot.slane %v1477_v52, 4  ;;  %v1582_v41 = vpack.c.bf16 %v1579_v40, %v1578_v39 }
 0x637   :  { %v1491_v57 = vsel %vm1188_vm1, %v1490_v56, %v1471_v55  ;;  %v1443_v58 = vpop.permute.xlu1 %1442 }
 0x638   :  { %v1463_v28 = vmul.f32 %v1443_v58, %v1399_v59  ;;  %v1495_v5 = vperm.slane %v1491_v57, %v3058_v44 }
 0x63a   :  { %v1485_v62 = vsel %vm1188_vm1, %v1484_v20, %v1463_v28  ;;  %v1504_v19 = vrot.slane %v1495_v5, 4  ;;  %v2190_v28 = vld [vmem:[%s3165_s10] ss:$0 sm:$0xff]  ;;  %s2467_s10 = smov [#allocation17]  }
 0x63b   :  { %v1489_v63 = vperm.slane %v1485_v62, %v3106_v10  ;;  %s1845_s0 = sshll.u32 %s2467_s10, 4  ;;  %s1846_s0 = int_to_ptr.vmem [resolvable:$true] %s1845_s0 }
 0x63d   :  { %v1496_v12 = vrot.slane %v1489_v63, 4 }
 0x63f   :  { %v1436_v26 = vpop.permute.xlu1 %1435 }
 0x640   :  { %v1462_v4 = vmul.f32 %v1436_v26, %v1389_v46 }
 0x642   :  { %v1479_v3 = vsel %vm1188_vm1, %v1478_v21, %v1462_v4 }
 0x643   :  { %v1483_v6 = vperm.slane %v1479_v3, %v3106_v10  ;;  %v2104_v10 = vld [vmem:[#allocation16 + $0x20] sm:$0xff] }
 0x644   :  { %1702 = vmatpush.bf16.msrb.mxu3 %v2104_v10 }
 0x645   :  { %v1497_v7 = vsel %vm1188_vm1, %v1496_v12, %v1483_v6 }
 0x646   :  { %v1501_v9 = vperm.slane %v1497_v7, %v3058_v44  ;;  %v2098_v44 = vld [vmem:[#allocation14 + $0x30] sm:$0xff] }
 0x648   :  { %v1505_v17 = vsel %vm1188_vm1, %v1501_v9, %v1504_v19  ;;  %v1502_v13 = vrot.slane %v1501_v9, 4  ;;  %1703 = vmatpush.bf16.msrb.mxu3 %v2103_v22 }
 0x649   :  { %v1507_v16 = vpack.c.bf16 %v1505_v17, %v1505_v17 }
 0x64a   :  { %v1503_v2 = vsel %vm1188_vm1, %v1502_v13, %v1495_v5 }
 0x64b   :  { %v1512_v23 = vsel %vm323_vm5, %v1507_v16, 0  ;;  %v1506_v15 = vpack.c.bf16 %v1503_v2, %v1503_v2 }
 0x64c   :  { %1534 = vmatpush.bf16.msra.mxu2 %v1512_v23  ;;  %1704 = vmatpush.bf16.msrb.mxu3 %v2102_v18 }
 0x64d   :  { %v1509_v0 = vsel %vm323_vm5, %v1506_v15, 0 }
 0x64e   :  { %1521 = vmatpush.bf16.msra.mxu1 %v1509_v0 }
 0x64f   :  { %2000 = vmatmul.msk.bf16.vlgmr.msra.gmra.mxu2 %vm1248_vm0, %v3094_v45 }
 0x650   :  { %1705 = vmatpush.bf16.msrb.mxu3 %v2101_v24 }
 0x651   :  { %1999 = vmatmul.msk.bf16.vlgmr.msra.gmra.mxu1 %vm1248_vm0, %v3094_v45  ;;  %v2100_v45 = vld [vmem:[#allocation16] sm:$0xff] }
 0x652   :  { %1761 = vmatpush.bf16.msrb.mxu1 %v2099_v14 }
 0x654   :  { %1706 = vmatpush.bf16.msrb.mxu3 %v2100_v45 }
 0x656   :  { %1762 = vmatpush.bf16.msrb.mxu1 %v2098_v44 }
 0x657   :  { %1707 = vmatmul.bf16.vlgmr.msrb.gmra.mxu3 %v1582_v41 }
 0x65a   :  { %1763 = vmatpush.bf16.msrb.mxu1 %v2097_v8 }
 0x65e   :  { %1764 = vmatpush.bf16.msrb.mxu1 %v2096_v30 }
 0x662   :  { %1765 = vmatpush.bf16.msrb.mxu1 %v2095_v33 }
 0x666   :  { %1766 = vmatpush.bf16.msrb.mxu1 %v2094_v36 }
 0x66a   :  { %1767 = vmatpush.bf16.msrb.mxu1 %v2093_v37 }
 0x66e   :  { %1768 = vmatpush.bf16.msrb.mxu1 %v2092_v42 }
 0x6ce   :  { %v1523_v43 = vpop.f32.mrf.mxu1 }
 0x6cf   :  { %v1540_v46 = vsub.f32 %v1523_v43, %v1503_v2 }
 0x6d1   :  { %1543 = vst [vmem:[#allocation4] ss:$2 sm:$0xff] %v1540_v46 }
 0x6d2   :  { %v1536_v47 = vpop.f32.mrf.mxu2 }
 0x6d3   :  { %v1541_v48 = vsub.f32 %v1536_v47, %v1505_v17 }
 0x6d5   :  { %1546 = vst [vmem:[#allocation4 + $0x1] ss:$2 sm:$0xff] %v1541_v48 }
 0x6d6   :  { %v1525_v49 = vpop.f32.mrf.mxu1 }
 0x6da   :  { %v1538_v50 = vpop.f32.mrf.mxu2  ;;  %v1708_v20 = vpop.f32.mrf.mxu3 }
 0x6dc   :  { %v1583_v51 = vld [vmem:[#allocation4] sm:$0x3]  ;;  %v1584_v52 = vld [vmem:[#allocation4 + $0x2] sm:$0x3]  ;;  %v1585_v53 = vld [vmem:[#allocation4 + $0x4] sm:$0x3] }
 0x6dd   :  { %v1586_v1 = vld [vmem:[#allocation4 + $0x6] sm:$0x3]  ;;  %1599 = vst [vmem:[#allocation1] ss:$4 sm:$0xff] %v1583_v51  ;;  %v1587_v54 = vld [vmem:[#allocation4 + $0x8] sm:$0x3] }
 0x6de   :  { %1601 = vst [vmem:[#allocation1 + $0x1] ss:$4 sm:$0xff] %v1584_v52  ;;  %v1588_v55 = vld [vmem:[#allocation4 + $0xa] sm:$0x3]  ;;  %v1589_v56 = vld [vmem:[#allocation4 + $0xc] sm:$0x3] }
 0x6df   :  { %1603 = vst [vmem:[#allocation1 + $0x2] ss:$4 sm:$0xff] %v1585_v53  ;;  %v1590_v57 = vld [vmem:[#allocation4 + $0xe] sm:$0x3] }
 0x6e0   :  { %1605 = vst [vmem:[#allocation1 + $0x3] ss:$4 sm:$0xff] %v1586_v1 }
 0x6e1   :  { %1607 = vst [vmem:[#allocation1 + $0x20] ss:$4 sm:$0xff] %v1587_v54 }
 0x6e2   :  { %1609 = vst [vmem:[#allocation1 + $0x21] ss:$4 sm:$0xff] %v1588_v55  ;;  %v1710_v26 = vpop.f32.mrf.mxu3 }
 0x6e3   :  { %1611 = vst [vmem:[#allocation1 + $0x22] ss:$4 sm:$0xff] %v1589_v56 }
 0x6e4   :  { %1613 = vst [vmem:[#allocation1 + $0x23] ss:$4 sm:$0xff] %v1590_v57 }
 0x6e7   :  { %v1614_v58 = vld.sshfl [vmem:[#allocation1] sm:$0xff pattern:$0x73625140] }
 0x6eb   :  { %v1615_v59 = vld.sshfl [vmem:[#allocation1 + $0x20] sm:$0xff pattern:$0x73625140] }
 0x6ec   :  { %v1618_v60 = vpack.c.bf16 %v1615_v59, %v1614_v58 }
 0x6ee   :  { %1769 = vmatmul.bf16.vlgmr.msrb.gmra.mxu1 %v1618_v60 }
 0x76b   :  { %v1770_v61 = vpop.f32.mrf.mxu1 }
 0x76c   :  { %v1771_v62 = vadd.f32 %v1770_v61, %v1708_v20 }
 0x76e   :  { %v1779_v38 = vadd.f32 %v2190_v28, %v1771_v62 }
 0x770   :  { %v2065_v63 = vmul.f32 -1.442695, %v1779_v38 }
 0x772   :  { %2213 = vpow2.f32 %v2065_v63 }
 0x773   :  { %v1772_v21 = vpop.f32.mrf.mxu1 }
 0x774   :  { %v1773_v4 = vadd.f32 %v1772_v21, %v1710_v26 }
 0x776   :  { %v1780_v3 = vadd.f32 %v2190_v28, %v1773_v4 }
 0x778   :  { %v2214_v5 = vpop.eup %2213  ;;  %v2066_v12 = vmul.f32 -1.442695, %v1780_v3 }
 0x779   :  { %v1787_v6 = vadd.f32 1.0, %v2214_v5 }
 0x77a   :  { %2215 = vpow2.f32 %v2066_v12 }
 0x77b   :  { %2217 = vrcp.f32 %v1787_v6  ;;  %v1800_v16 = vand.u32 2147483648, %v1787_v6  ;;  %v1798_v23 = vand.u32 2147483647, %v1787_v6  ;;  %vm1794_vm2 = vweird.f32 %v1787_v6 }
 0x77d   :  { %v1801_v0 = vor.u32 1.1754944e-38, %v1800_v16  ;;  %vm1799_vm6 = vcmp.eq.f32.partialorder %v1798_v23, 8.507059e+37 }
 0x780   :  { %v2216_v7 = vpop.eup %2215 }
 0x781   :  { %v2218_v9 = vpop.eup %2217  ;;  %v1788_v19 = vadd.f32 1.0, %v2216_v7 }
 0x782   :  { %v1790_v17 = vmul.f32 %v2218_v9, %v1787_v6  ;;  %vm1795_vm5 = vweird.f32 %v2218_v9 }
 0x783   :  { %2219 = vrcp.f32 %v1788_v19  ;;  %vm1796_vm4 = vmor %vm1794_vm2, %vm1795_vm5  ;;  %v1815_v24 = vand.u32 2147483648, %v1788_v19  ;;  %v1813_v29 = vand.u32 2147483647, %v1788_v19  ;;  %vm1809_vm8 = vweird.f32 %v1788_v19 }
 0x784   :  { %v1791_v13 = vsub.f32 1.0, %v1790_v17 }
 0x785   :  { %v1816_v31 = vor.u32 1.1754944e-38, %v1815_v24  ;;  %vm1814_vm1 = vcmp.eq.f32.partialorder %v1813_v29, 8.507059e+37 }
 0x786   :  { %v1792_v2 = vmul.f32 %v2218_v9, %v1791_v13 }
 0x788   :  { %v1793_v15 = vadd.f32 %v2218_v9, %v1792_v2 }
 0x789   :  { %v2220_v14 = vpop.eup %2219 }
 0x78a   :  { %v1797_v44 = vsel %vm1796_vm4, %v2218_v9, %v1793_v15  ;;  %v1805_v10 = vmul.f32 %v2220_v14, %v1788_v19  ;;  %vm1810_vm7 = vweird.f32 %v2220_v14 }
 0x78b   :  { %v1802_v22 = vsel %vm1799_vm6, %v1801_v0, %v1797_v44  ;;  %vm1811_vm9 = vmor %vm1809_vm8, %vm1810_vm7 }
 0x78c   :  { %v1821_v18 = vrot.slane %v1802_v22, 2  ;;  %v1822_v8 = vrot.slane %v1802_v22, 4  ;;  %v1823_v27 = vrot.slane %v1802_v22, 6  ;;  %1833 = vst [vmem:[#allocation17] sm:$0x3] %v1802_v22  ;;  %v1806_v11 = vsub.f32 1.0, %v1805_v10 }
 0x78e   :  { %1834 = vst [vmem:[#allocation17 + $0x2] sm:$0x3] %v1821_v18  ;;  %v1807_v25 = vmul.f32 %v2220_v14, %v1806_v11 }
 0x78f   :  { %1835 = vst [vmem:[#allocation17 + $0x4] sm:$0x3] %v1822_v8 }
 0x790   :  { %1836 = vst [vmem:[#allocation17 + $0x6] sm:$0x3] %v1823_v27  ;;  %v1808_v30 = vadd.f32 %v2220_v14, %v1807_v25 }
 0x792   :  { %v1812_v45 = vsel %vm1811_vm9, %v2220_v14, %v1808_v30 }
 0x793   :  { %v1817_v32 = vsel %vm1814_vm1, %v1816_v31, %v1812_v45 }
 0x794   :  { %v1824_v33 = vrot.slane %v1817_v32, 2  ;;  %v1825_v34 = vrot.slane %v1817_v32, 4  ;;  %v1826_v35 = vrot.slane %v1817_v32, 6  ;;  %1837 = vst [vmem:[#allocation17 + $0x8] sm:$0x3] %v1817_v32 }
 0x796   :  { %1838 = vst [vmem:[#allocation17 + $0xa] sm:$0x3] %v1824_v33 }
 0x797   :  { %1839 = vst [vmem:[#allocation17 + $0xc] sm:$0x3] %v1825_v34 }
 0x798   :  { %1840 = vst [vmem:[#allocation17 + $0xe] sm:$0x3] %v1826_v35 }
 0x799   :  { %1853 = dma.vmem_to_hbm [thread:$0]  %s1846_s0, 256, %s1848_s25, [#allocation7], %s2455_s20, %s2455_s20, %s2456_s8  }
 0x79a   :  { %2433 = dma.done.wait [#allocation7], 256  }
 0x79b   :  { %2434 = vsyncadd [#allocation7], 4294967040 }
 0x79c   :  { %1858 = vsyncpa [#allocation6], 1 }
 0x79d   :  { %1859 = vsyncpa [#allocation9], 1 }
 0x79e   :  { %1860 = vsyncpa [#allocation12], 1 }
 0x79f   :  { %1861 = vsyncpa [#allocation15], 1 }
 0x7a0   :  { %1862 = vsyncpa [#allocation7], 1 }

</bundles_post_ra>
